<compile_context>
chip_gen: v7x
topology: tpu7x:2x2x1
jax: 0.10.0
libtpu: 0.0.40
codegen_flags: <defaults>
</compile_context>

<pallas_src>
import math

import jax
import jax.numpy as jnp
from jax import lax
from jax.experimental import pallas as pl
from jax.experimental.pallas import tpu as pltpu


def _round_up(x, m):
    return (x + m - 1) // m * m


# parity -> ((dy, ky), (dy, ky)): which 3x3-window row taps (of the 1-padded
# high map) and which ConvTranspose kernel rows feed that output-row parity
# (the same table is used for columns / kx).
_TAPMAP = {0: ((0, 3), (1, 1)), 1: ((1, 2), (2, 0))}


def _pack_params(pt_params, Cl, Ch, Clp, Chp, cdt):
    """Repack PyTorch-native parameters into per-tap blocks (padded channels)."""
    (w1_pt, w3_pt, wt_pt, (s1, b1), (s3, b3), (st, bt)) = pt_params
    f32 = jnp.float32

    # 1x1 conv (attention branch) -- tiny, kept in f32.
    w1 = jnp.zeros((Clp, Ch), f32).at[:Cl, :].set(w1_pt[:, :, 0, 0].astype(f32))

    # 3x3 conv -> 9 per-tap (Clp, Clp) blocks, tap index t = 3*dy + dx.
    w3 = jnp.zeros((9, Clp, Clp), f32)
    w3 = w3.at[:, :Cl, :Cl].set(
        jnp.transpose(w3_pt.astype(f32), (2, 3, 0, 1)).reshape(9, Cl, Cl))

    # ConvTranspose2d(4,2,1) -> parity-decomposed per-tap blocks, flattened to
    # (16, Clp, Chp) with index q*4 + a*2 + b  (q = 2*py + px).
    wt = jnp.zeros((4, 2, 2, Clp, Chp), f32)
    for py in (0, 1):
        for px in (0, 1):
            q = 2 * py + px
            for a, (_, ky) in enumerate(_TAPMAP[py]):
                for b, (_, kx) in enumerate(_TAPMAP[px]):
                    blk = jnp.transpose(wt_pt[:, :, ky, kx]).astype(f32)  # (Cl, Ch)
                    wt = wt.at[q, a, b, :Cl, :Ch].set(blk)
    wt = wt.reshape(16, Clp, Chp)

    def col(v, n):
        return jnp.zeros((n, 1), f32).at[:Cl, 0].set(v.astype(f32))

    stt = jnp.zeros((4 * Clp, 1), f32)
    btt = jnp.zeros((4 * Clp, 1), f32)
    for q in range(4):
        stt = stt.at[q * Clp:q * Clp + Cl, 0].set(st.astype(f32))
        btt = btt.at[q * Clp:q * Clp + Cl, 0].set(bt.astype(f32))

    return (w1, col(s1, Clp), col(b1, Clp), w3.astype(cdt), col(s3, Clp),
            col(b3, Clp), wt.astype(cdt), stt, btt)


def global_attention_upsample(fms_high, fms_low, pt_params,
                              compute_dtype=jnp.float32):
    """fms_high: (B, Ch, h, w), fms_low: (B, Cl, 2h, 2w) NCHW -> (B, Cl, 2h, 2w)."""
    B, Ch, h, w = fms_high.shape
    Bl, Cl, H, W = fms_low.shape
    assert Bl == B and H == 2 * h and W == 2 * w, "low features must be 2x high spatial size"
    p, P = h * w, H * W
    Clp, Chp = _round_up(Cl, 8), _round_up(Ch, 8)
    f32, cdt = jnp.float32, jnp.dtype(compute_dtype)

    (w1, s1, b1, w3, s3, b3, wt, st, bt) = _pack_params(pt_params, Cl, Ch, Clp, Chp, cdt)
    weights = (w1, s1, b1, w3, s3, b3, wt, st, bt)

    # Flat-spatial views: free reshapes of contiguous NCHW.  HBM stays f32 so
    # the global-average-pool is exact even on the bf16 compute path.
    high = fms_high.reshape(B, Ch, p).astype(f32)
    low = fms_low.reshape(B, Cl, P).astype(f32)

    # Padded flat scratch geometry: interior starts at a 128-aligned offset.
    # Tap (dy,dx) reads [base + dy*width + dx, +n_cols) with base = pad-(width+1).
    LP = _round_up(W + 1, 128)
    LW = _round_up(LP + P + W + 1, 128)
    HP = _round_up(w + 1, 128)
    HW = _round_up(HP + p + w + 1, 128)

    def kernel(high_ref, low_ref, w1_ref, s1_ref, b1_ref, w3_ref, s3_ref,
               b3_ref, wt_ref, st_ref, bt_ref, att_ref, up_ref,
               lp_ref, hp_ref, macc_ref, uacc_ref):
        # --- refresh padded scratch: zero only the pad columns / pad channel
        #     rows, then copy the interiors (128-aligned, lane-dense) ----------
        lp_ref[:, 0:LP] = jnp.zeros((Clp, LP), cdt)
        lp_ref[:, LP + P:LW] = jnp.zeros((Clp, LW - LP - P), cdt)
        if Clp > Cl:
            lp_ref[Cl:Clp, LP:LP + P] = jnp.zeros((Clp - Cl, P), cdt)
        lp_ref[0:Cl, LP:LP + P] = low_ref[0].astype(cdt)

        hp_ref[:, 0:HP] = jnp.zeros((Chp, HP), cdt)
        hp_ref[:, HP + p:HW] = jnp.zeros((Chp, HW - HP - p), cdt)
        if Chp > Ch:
            hp_ref[Ch:Chp, HP:HP + p] = jnp.zeros((Chp - Ch, p), cdt)
        hp_ref[0:Ch, HP:HP + p] = high_ref[0].astype(cdt)

        # --- attention branch: GAP first (lane reduce), then tiny 1x1 conv ----
        gp = jnp.sum(high_ref[0], axis=1, keepdims=True) * (1.0 / p)     # (Ch, 1)
        att = jnp.dot(w1_ref[...], jnp.broadcast_to(gp, (Ch, 128)),
                      preferred_element_type=f32)[:, 0:1]                # (Clp, 1)
        att = jnp.maximum(att * s1_ref[...] + b1_ref[...], 0.0)

        # --- horizontal-edge validity masks (vertical edges hit the zero pad) -
        xL = lax.broadcasted_iota(jnp.int32, (1, P), 1) % W
        okL = {0: xL > 0, 2: xL < W - 1}
        xH = lax.broadcasted_iota(jnp.int32, (1, p), 1) % w
        okH = {0: xH > 0, 2: xH < w - 1}

        def window(ref, base, wid, n_cols, dy, dx, ok):
            s = base + dy * wid + dx
            win = ref[:, s:s + n_cols]
            if dx in ok:
                win = jnp.where(ok[dx], win, 0.0)
            return win

        # --- mask branch: 3x3 conv as 9 accumulated per-tap matmuls -----------
        for t in range(9):
            dy, dx = t // 3, t % 3
            win = window(lp_ref, LP - (W + 1), W, P, dy, dx, okL)        # (Clp, P)
            contrib = jnp.dot(w3_ref[t], win, preferred_element_type=f32)
            if t == 0:
                macc_ref[...] = contrib
            else:
                macc_ref[...] += contrib
        fms_att = (macc_ref[...] * s3_ref[...] + b3_ref[...]) * att
        att_ref[0] = fms_att.astype(att_ref.dtype)

        # --- upsample branch: ConvTranspose2d(4,2,1) via parity decomposition -
        for q in range(4):
            py, px = q // 2, q % 2
            r0 = q * Clp
            first = True
            for a, (dy, _) in enumerate(_TAPMAP[py]):
                for b, (dx, _) in enumerate(_TAPMAP[px]):
                    win = window(hp_ref, HP - (w + 1), w, p, dy, dx, okH)
                    contrib = jnp.dot(wt_ref[q * 4 + a * 2 + b], win,
                                      preferred_element_type=f32)        # (Clp, p)
                    if first:
                        uacc_ref[r0:r0 + Clp, :] = contrib
                        first = False
                    else:
                        uacc_ref[r0:r0 + Clp, :] += contrib
        up = jnp.maximum(uacc_ref[...] * st_ref[...] + bt_ref[...], 0.0)
        up_ref[0] = up.astype(up_ref.dtype)

    def full_spec(arr):
        nd = arr.ndim
        return pl.BlockSpec(arr.shape, lambda b, _nd=nd: (0,) * _nd)

    # Generous per-step VMEM budget (double-buffered ins/outs + scratch + slack).
    nb = lambda shape, dt: math.prod(shape) * jnp.dtype(dt).itemsize
    work = (2 * (nb((1, Ch, p), f32) + nb((1, Cl, P), f32))
            + 2 * sum(int(x.size) * x.dtype.itemsize for x in weights)
            + 2 * (nb((1, Clp, P), f32) + nb((1, 4 * Clp, p), f32))
            + nb((Clp, LW), cdt) + nb((Chp, HW), cdt)
            + nb((Clp, P), f32) + nb((4 * Clp, p), f32))
    vmem_limit = int(min(100 << 20, max(2 * work, 16 << 20)))

    att_flat, up_par = pl.pallas_call(
        kernel,
        out_shape=(jax.ShapeDtypeStruct((B, Clp, P), f32),
                   jax.ShapeDtypeStruct((B, 4 * Clp, p), f32)),
        grid=(B,),
        in_specs=[
            pl.BlockSpec((1, Ch, p), lambda b: (b, 0, 0)),
            pl.BlockSpec((1, Cl, P), lambda b: (b, 0, 0)),
        ] + [full_spec(x) for x in weights],
        out_specs=(pl.BlockSpec((1, Clp, P), lambda b: (b, 0, 0)),
                   pl.BlockSpec((1, 4 * Clp, p), lambda b: (b, 0, 0))),
        scratch_shapes=[
            pltpu.VMEM((Clp, LW), cdt),        # padded low (flat)
            pltpu.VMEM((Chp, HW), cdt),        # padded high (flat)
            pltpu.VMEM((Clp, P), f32),         # 3x3-conv accumulator
            pltpu.VMEM((4 * Clp, p), f32),     # parity-plane accumulator
        ],
        compiler_params=pltpu.CompilerParams(
            dimension_semantics=("parallel",),
            vmem_limit_bytes=vmem_limit),
    )(high, low, *weights)

    # Free layout plumbing in the wrapper: drop channel padding, interleave the
    # 4 parity planes to full resolution, add the attention-weighted mask.
    fms_att = att_flat[:, :Cl, :].reshape(B, Cl, H, W)
    up = up_par.reshape(B, 2, 2, Clp, h, w)[:, :, :, :Cl]
    up = jnp.transpose(up, (0, 3, 4, 1, 5, 2)).reshape(B, Cl, H, W)
    return up + fms_att


def init_params(key, Ch, Cl, eps=1e-5):
    """Deterministic synthetic parameters in PyTorch-native shapes; BN folded (eval)."""
    ks = jax.random.split(key, 15)
    w1_pt = 0.1 * jax.random.normal(ks[0], (Cl, Ch, 1, 1), jnp.float32)   # Conv2d OIHW
    w3_pt = 0.1 * jax.random.normal(ks[1], (Cl, Cl, 3, 3), jnp.float32)   # Conv2d OIHW
    wt_pt = 0.1 * jax.random.normal(ks[2], (Ch, Cl, 4, 4), jnp.float32)   # ConvT (in,out,kH,kW)

    def bn(kg, kb, km, kv):
        gamma = 1.0 + 0.1 * jax.random.normal(kg, (Cl,), jnp.float32)
        beta = 0.1 * jax.random.normal(kb, (Cl,), jnp.float32)
        mean = 0.1 * jax.random.normal(km, (Cl,), jnp.float32)
        var = jnp.abs(jax.random.normal(kv, (Cl,), jnp.float32)) + 0.5
        scale = gamma / jnp.sqrt(var + eps)
        return scale, beta - mean * scale

    return (w1_pt, w3_pt, wt_pt, bn(*ks[3:7]), bn(*ks[7:11]), bn(*ks[11:15]))


def reference(fms_high, fms_low, pt_params):
    """Pure-JAX NCHW reference (XLA convolutions) using the PyTorch-native params."""
    (w1_pt, w3_pt, wt_pt, (s1, b1), (s3, b3), (st, bt)) = pt_params
    f32 = jnp.float32
    dn = ("NCHW", "OIHW", "NCHW")
    hp = lax.Precision.HIGHEST
    high, low = fms_high.astype(f32), fms_low.astype(f32)

    gp = jnp.mean(high, axis=(2, 3))                                         # (B, Ch)
    att = jnp.maximum(jnp.dot(gp, w1_pt[:, :, 0, 0].T, precision=hp) * s1 + b1, 0.0)

    mask = lax.conv_general_dilated(low, w3_pt, (1, 1), [(1, 1), (1, 1)],
                                    dimension_numbers=dn, precision=hp)
    mask = mask * s3[None, :, None, None] + b3[None, :, None, None]
    fms_att = mask * att[:, :, None, None]

    wt_oihw = jnp.transpose(wt_pt, (1, 0, 2, 3))[:, :, ::-1, ::-1]
    up = lax.conv_general_dilated(high, wt_oihw, (1, 1), [(2, 2), (2, 2)],
                                  lhs_dilation=(2, 2), dimension_numbers=dn,
                                  precision=hp)
    up = jnp.maximum(up * st[None, :, None, None] + bt[None, :, None, None], 0.0)
    return up + fms_att


if __name__ == "__main__":
    key = jax.random.PRNGKey(0)
    k_high, k_low, k_params = jax.random.split(key, 3)

    B, Ch, Cl, h, w = 2, 8, 4, 8, 8          # channels_high=8, channels_low=4
    fms_high = jax.random.normal(k_high, (B, Ch, h, w), jnp.float32)
    fms_low = jax.random.normal(k_low, (B, Cl, 2 * h, 2 * w), jnp.float32)
    params = init_params(k_params, Ch, Cl)

    ref = jax.block_until_ready(reference(fms_high, fms_low, params))

    # f32 compute path (tight tolerance).
    out_f32 = jax.block_until_ready(
        global_attention_upsample(fms_high, fms_low, params, jnp.float32))
    assert out_f32.shape == (B, Cl, 2 * h, 2 * w)
    err32 = float(jnp.max(jnp.abs(out_f32 - ref)))
    if not jnp.allclose(out_f32, ref, atol=1e-3, rtol=1e-3):
        raise AssertionError(f"f32 Pallas kernel mismatch vs reference (max err {err32:e})")

    # bf16 MXU-operand path (loose tolerance; f32 accumulation, f32 elementwise).
    out_bf16 = jax.block_until_ready(
        global_attention_upsample(fms_high, fms_low, params, jnp.bfloat16))
    errbf = float(jnp.max(jnp.abs(out_bf16 - ref)))
    if not jnp.allclose(out_bf16, ref, atol=1e-1, rtol=1e-1):
        raise AssertionError(f"bf16 Pallas kernel mismatch vs reference (max err {errbf:e})")

    print("KERNEL_OK")
</pallas_src>

<mosaic_0001>
module attributes {stable_mosaic.version = 11 : i64} {
  func.func @kernel(%arg0: i32, %arg1: memref<1x8x64xf32, #tpu.memory_space<vmem>>, %arg2: memref<1x4x256xf32, #tpu.memory_space<vmem>>, %arg3: memref<8x8xf32, #tpu.memory_space<vmem>>, %arg4: memref<8x1xf32, #tpu.memory_space<vmem>>, %arg5: memref<8x1xf32, #tpu.memory_space<vmem>>, %arg6: memref<9x8x8xf32, #tpu.memory_space<vmem>>, %arg7: memref<8x1xf32, #tpu.memory_space<vmem>>, %arg8: memref<8x1xf32, #tpu.memory_space<vmem>>, %arg9: memref<16x8x8xf32, #tpu.memory_space<vmem>>, %arg10: memref<32x1xf32, #tpu.memory_space<vmem>>, %arg11: memref<32x1xf32, #tpu.memory_space<vmem>>, %arg12: memref<1x8x256xf32, #tpu.memory_space<vmem>>, %arg13: memref<1x32x64xf32, #tpu.memory_space<vmem>>, %arg14: memref<8x512xf32, #tpu.memory_space<vmem>>, %arg15: memref<8x256xf32, #tpu.memory_space<vmem>>, %arg16: memref<8x256xf32, #tpu.memory_space<vmem>>, %arg17: memref<32x64xf32, #tpu.memory_space<vmem>>) attributes {dimension_semantics = [#tpu.dimension_semantics<parallel>], iteration_bounds = array<i64: 2>, scalar_prefetch = 0 : i64, scratch_operands = 4 : i64, tpu.core_type = #tpu.core_type<tc>, window_params = [{transform_indices = @transform_0, window_bounds = array<i64: 1, 8, 64>}, {transform_indices = @transform_1, window_bounds = array<i64: 1, 4, 256>}, {pipeline_mode = #tpu.pipeline_mode<synchronous>, transform_indices = @transform_2, window_bounds = array<i64: 8, 8>}, {pipeline_mode = #tpu.pipeline_mode<synchronous>, transform_indices = @transform_3, window_bounds = array<i64: 8, 1>}, {pipeline_mode = #tpu.pipeline_mode<synchronous>, transform_indices = @transform_4, window_bounds = array<i64: 8, 1>}, {pipeline_mode = #tpu.pipeline_mode<synchronous>, transform_indices = @transform_5, window_bounds = array<i64: 9, 8, 8>}, {pipeline_mode = #tpu.pipeline_mode<synchronous>, transform_indices = @transform_6, window_bounds = array<i64: 8, 1>}, {pipeline_mode = #tpu.pipeline_mode<synchronous>, transform_indices = @transform_7, window_bounds = array<i64: 8, 1>}, {pipeline_mode = #tpu.pipeline_mode<synchronous>, transform_indices = @transform_8, window_bounds = array<i64: 16, 8, 8>}, {pipeline_mode = #tpu.pipeline_mode<synchronous>, transform_indices = @transform_9, window_bounds = array<i64: 32, 1>}, {pipeline_mode = #tpu.pipeline_mode<synchronous>, transform_indices = @transform_10, window_bounds = array<i64: 32, 1>}, {transform_indices = @transform_11, window_bounds = array<i64: 1, 8, 256>}, {transform_indices = @transform_12, window_bounds = array<i64: 1, 32, 64>}]} {
    %cst = arith.constant 0.000000e+00 : f32
    %0 = vector.broadcast %cst : f32 to vector<8x128xf32>
    %c0 = arith.constant 0 : index
    %c0_0 = arith.constant 0 : index
    %1 = vector.load %arg14[%c0, %c0_0] : memref<8x512xf32, #tpu.memory_space<vmem>>, vector<8x128xf32>
    tpu.vector_store %arg14[%c0, %c0_0], %0 {strides = array<i32>} : memref<8x512xf32, #tpu.memory_space<vmem>>, vector<8x128xf32>,
    %cst_1 = arith.constant 0.000000e+00 : f32
    %2 = vector.broadcast %cst_1 : f32 to vector<8x128xf32>
    %c0_2 = arith.constant 0 : index
    %c384 = arith.constant 384 : index
    %3 = vector.load %arg14[%c0_2, %c384] : memref<8x512xf32, #tpu.memory_space<vmem>>, vector<8x128xf32>
    tpu.vector_store %arg14[%c0_2, %c384], %2 {strides = array<i32>} : memref<8x512xf32, #tpu.memory_space<vmem>>, vector<8x128xf32>,
    %cst_3 = arith.constant 0.000000e+00 : f32
    %4 = vector.broadcast %cst_3 : f32 to vector<4x256xf32>
    %c4 = arith.constant 4 : index
    %c128 = arith.constant 128 : index
    %5 = vector.load %arg14[%c4, %c128] : memref<8x512xf32, #tpu.memory_space<vmem>>, vector<4x256xf32>
    tpu.vector_store %arg14[%c4, %c128], %4 {strides = array<i32>} : memref<8x512xf32, #tpu.memory_space<vmem>>, vector<4x256xf32>,
    %c0_4 = arith.constant 0 : index
    %c0_5 = arith.constant 0 : index
    %c0_6 = arith.constant 0 : index
    %6 = vector.load %arg2[%c0_4, %c0_5, %c0_6] : memref<1x4x256xf32, #tpu.memory_space<vmem>>, vector<1x4x256xf32>
    %7 = vector.shape_cast %6 : vector<1x4x256xf32> to vector<4x256xf32>
    %c0_7 = arith.constant 0 : index
    %c128_8 = arith.constant 128 : index
    %8 = vector.load %arg14[%c0_7, %c128_8] : memref<8x512xf32, #tpu.memory_space<vmem>>, vector<4x256xf32>
    tpu.vector_store %arg14[%c0_7, %c128_8], %7 {strides = array<i32>} : memref<8x512xf32, #tpu.memory_space<vmem>>, vector<4x256xf32>,
    %cst_9 = arith.constant 0.000000e+00 : f32
    %9 = vector.broadcast %cst_9 : f32 to vector<8x128xf32>
    %c0_10 = arith.constant 0 : index
    %c0_11 = arith.constant 0 : index
    %10 = vector.load %arg15[%c0_10, %c0_11] : memref<8x256xf32, #tpu.memory_space<vmem>>, vector<8x128xf32>
    tpu.vector_store %arg15[%c0_10, %c0_11], %9 {strides = array<i32>} : memref<8x256xf32, #tpu.memory_space<vmem>>, vector<8x128xf32>,
    %cst_12 = arith.constant 0.000000e+00 : f32
    %11 = vector.broadcast %cst_12 : f32 to vector<8x64xf32>
    %c0_13 = arith.constant 0 : index
    %c192 = arith.constant 192 : index
    %12 = vector.load %arg15[%c0_13, %c192] : memref<8x256xf32, #tpu.memory_space<vmem>>, vector<8x64xf32>
    tpu.vector_store %arg15[%c0_13, %c192], %11 {strides = array<i32>} : memref<8x256xf32, #tpu.memory_space<vmem>>, vector<8x64xf32>,
    %c0_14 = arith.constant 0 : index
    %c0_15 = arith.constant 0 : index
    %c0_16 = arith.constant 0 : index
    %13 = vector.load %arg1[%c0_14, %c0_15, %c0_16] : memref<1x8x64xf32, #tpu.memory_space<vmem>>, vector<1x8x64xf32>
    %14 = vector.shape_cast %13 : vector<1x8x64xf32> to vector<8x64xf32>
    %c0_17 = arith.constant 0 : index
    %c128_18 = arith.constant 128 : index
    %15 = vector.load %arg15[%c0_17, %c128_18] : memref<8x256xf32, #tpu.memory_space<vmem>>, vector<8x64xf32>
    tpu.vector_store %arg15[%c0_17, %c128_18], %14 {strides = array<i32>} : memref<8x256xf32, #tpu.memory_space<vmem>>, vector<8x64xf32>,
    %c0_19 = arith.constant 0 : index
    %c0_20 = arith.constant 0 : index
    %c0_21 = arith.constant 0 : index
    %16 = vector.load %arg1[%c0_19, %c0_20, %c0_21] : memref<1x8x64xf32, #tpu.memory_space<vmem>>, vector<1x8x64xf32>
    %17 = vector.shape_cast %16 : vector<1x8x64xf32> to vector<8x64xf32>
    %cst_22 = arith.constant dense<0.000000e+00> : vector<8xf32>
    %18 = vector.multi_reduction <add>, %17, %cst_22 [1] : vector<8x64xf32> to vector<8xf32>
    %19 = vector.shape_cast %18 : vector<8xf32> to vector<8x1xf32>
    %cst_23 = arith.constant 1.562500e-02 : f32
    %20 = vector.broadcast %cst_23 : f32 to vector<8x1xf32>
    %21 = arith.mulf %19, %20 : vector<8x1xf32>
    %c0_24 = arith.constant 0 : index
    %c0_25 = arith.constant 0 : index
    %22 = vector.load %arg3[%c0_24, %c0_25] : memref<8x8xf32, #tpu.memory_space<vmem>>, vector<8x8xf32>
    %23 = vector.shape_cast %21 : vector<8x1xf32> to vector<8x1xf32>
    %24 = vector.broadcast %23 : vector<8x1xf32> to vector<8x128xf32>
    %cst_26 = arith.constant dense<0.000000e+00> : vector<8x128xf32>
    %25 = tpu.matmul %22, %24, %cst_26 {dimension_numbers = #tpu.dot_dimension_numbers<[1], [0], [0], [1], [0, 0, 1, 1], [], []>} : vector<8x8xf32>, vector<8x128xf32>, vector<8x128xf32> -> vector<8x128xf32>
    %26 = vector.extract_strided_slice %25 {offsets = [0, 0], sizes = [8, 1], strides = [1, 1]} : vector<8x128xf32> to vector<8x1xf32>
    %c0_27 = arith.constant 0 : index
    %c0_28 = arith.constant 0 : index
    %27 = vector.load %arg4[%c0_27, %c0_28] : memref<8x1xf32, #tpu.memory_space<vmem>>, vector<8x1xf32>
    %28 = arith.mulf %26, %27 : vector<8x1xf32>
    %c0_29 = arith.constant 0 : index
    %c0_30 = arith.constant 0 : index
    %29 = vector.load %arg5[%c0_29, %c0_30] : memref<8x1xf32, #tpu.memory_space<vmem>>, vector<8x1xf32>
    %30 = arith.addf %28, %29 : vector<8x1xf32>
    %cst_31 = arith.constant 0.000000e+00 : f32
    %31 = vector.broadcast %cst_31 : f32 to vector<8x1xf32>
    %32 = arith.maximumf %30, %31 : vector<8x1xf32>
    %33 = tpu.iota {dimensions = array<i32: 1>} : vector<1x256xi32>
    %c16_i32 = arith.constant 16 : i32
    %c0_i32 = arith.constant 0 : i32
    %34 = arith.cmpi eq, %c16_i32, %c0_i32 : i32
    %c1_i32 = arith.constant 1 : i32
    %35 = arith.select %34, %c1_i32, %c16_i32 : i32
    %36 = vector.broadcast %35 : i32 to vector<1x256xi32>
    %37 = arith.remsi %33, %36 : vector<1x256xi32>
    %c0_i32_32 = arith.constant 0 : i32
    %38 = vector.broadcast %c0_i32_32 : i32 to vector<1x256xi32>
    %39 = arith.cmpi ne, %37, %38 : vector<1x256xi32>
    %c0_i32_33 = arith.constant 0 : i32
    %40 = vector.broadcast %c0_i32_33 : i32 to vector<1x256xi32>
    %41 = arith.cmpi slt, %37, %40 : vector<1x256xi32>
    %c0_i32_34 = arith.constant 0 : i32
    %42 = arith.cmpi slt, %35, %c0_i32_34 : i32
    %43 = vector.broadcast %42 : i1 to vector<1x256xi1>
    %44 = vector.broadcast %43 : vector<1x256xi1> to vector<1x256xi1>
    %45 = arith.xori %41, %44 : vector<1x256xi1>
    %46 = arith.andi %45, %39 : vector<1x256xi1>
    %47 = vector.broadcast %35 : i32 to vector<1x256xi32>
    %48 = arith.addi %37, %47 : vector<1x256xi32>
    %49 = arith.select %46, %48, %37 : vector<1x256xi1>, vector<1x256xi32>
    %c0_i32_35 = arith.constant 0 : i32
    %50 = vector.broadcast %c0_i32_35 : i32 to vector<1x256xi32>
    %51 = arith.cmpi sgt, %49, %50 : vector<1x256xi32>
    %c15_i32 = arith.constant 15 : i32
    %52 = vector.broadcast %c15_i32 : i32 to vector<1x256xi32>
    %53 = arith.cmpi slt, %49, %52 : vector<1x256xi32>
    %54 = tpu.iota {dimensions = array<i32: 1>} : vector<1x64xi32>
    %c8_i32 = arith.constant 8 : i32
    %c0_i32_36 = arith.constant 0 : i32
    %55 = arith.cmpi eq, %c8_i32, %c0_i32_36 : i32
    %c1_i32_37 = arith.constant 1 : i32
    %56 = arith.select %55, %c1_i32_37, %c8_i32 : i32
    %57 = vector.broadcast %56 : i32 to vector<1x64xi32>
    %58 = arith.remsi %54, %57 : vector<1x64xi32>
    %c0_i32_38 = arith.constant 0 : i32
    %59 = vector.broadcast %c0_i32_38 : i32 to vector<1x64xi32>
    %60 = arith.cmpi ne, %58, %59 : vector<1x64xi32>
    %c0_i32_39 = arith.constant 0 : i32
    %61 = vector.broadcast %c0_i32_39 : i32 to vector<1x64xi32>
    %62 = arith.cmpi slt, %58, %61 : vector<1x64xi32>
    %c0_i32_40 = arith.constant 0 : i32
    %63 = arith.cmpi slt, %56, %c0_i32_40 : i32
    %64 = vector.broadcast %63 : i1 to vector<1x64xi1>
    %65 = vector.broadcast %64 : vector<1x64xi1> to vector<1x64xi1>
    %66 = arith.xori %62, %65 : vector<1x64xi1>
    %67 = arith.andi %66, %60 : vector<1x64xi1>
    %68 = vector.broadcast %56 : i32 to vector<1x64xi32>
    %69 = arith.addi %58, %68 : vector<1x64xi32>
    %70 = arith.select %67, %69, %58 : vector<1x64xi1>, vector<1x64xi32>
    %c0_i32_41 = arith.constant 0 : i32
    %71 = vector.broadcast %c0_i32_41 : i32 to vector<1x64xi32>
    %72 = arith.cmpi sgt, %70, %71 : vector<1x64xi32>
    %c7_i32 = arith.constant 7 : i32
    %73 = vector.broadcast %c7_i32 : i32 to vector<1x64xi32>
    %74 = arith.cmpi slt, %70, %73 : vector<1x64xi32>
    %c0_42 = arith.constant 0 : index
    %c111 = arith.constant 111 : index
    %75 = vector.load %arg14[%c0_42, %c111] : memref<8x512xf32, #tpu.memory_space<vmem>>, vector<8x256xf32>
    %cst_43 = arith.constant 0.000000e+00 : f32
    %76 = vector.shape_cast %51 : vector<1x256xi1> to vector<1x256xi1>
    %77 = vector.broadcast %76 : vector<1x256xi1> to vector<8x256xi1>
    %78 = vector.broadcast %cst_43 : f32 to vector<8x256xf32>
    %79 = arith.select %77, %75, %78 : vector<8x256xi1>, vector<8x256xf32>
    %c0_44 = arith.constant 0 : index
    %c0_45 = arith.constant 0 : index
    %c0_46 = arith.constant 0 : index
    %80 = vector.load %arg6[%c0_44, %c0_45, %c0_46] : memref<9x8x8xf32, #tpu.memory_space<vmem>>, vector<1x8x8xf32>
    %81 = vector.shape_cast %80 : vector<1x8x8xf32> to vector<8x8xf32>
    %cst_47 = arith.constant dense<0.000000e+00> : vector<8x256xf32>
    %82 = tpu.matmul %81, %79, %cst_47 {dimension_numbers = #tpu.dot_dimension_numbers<[1], [0], [0], [1], [0, 0, 1, 1], [], []>} : vector<8x8xf32>, vector<8x256xf32>, vector<8x256xf32> -> vector<8x256xf32>
    %c0_48 = arith.constant 0 : index
    %c0_49 = arith.constant 0 : index
    %83 = vector.load %arg16[%c0_48, %c0_49] : memref<8x256xf32, #tpu.memory_space<vmem>>, vector<8x256xf32>
    tpu.vector_store %arg16[%c0_48, %c0_49], %82 {strides = array<i32>} : memref<8x256xf32, #tpu.memory_space<vmem>>, vector<8x256xf32>,
    %c0_50 = arith.constant 0 : index
    %c112 = arith.constant 112 : index
    %84 = vector.load %arg14[%c0_50, %c112] : memref<8x512xf32, #tpu.memory_space<vmem>>, vector<8x256xf32>
    %c1 = arith.constant 1 : index
    %c0_51 = arith.constant 0 : index
    %c0_52 = arith.constant 0 : index
    %85 = vector.load %arg6[%c1, %c0_51, %c0_52] : memref<9x8x8xf32, #tpu.memory_space<vmem>>, vector<1x8x8xf32>
    %86 = vector.shape_cast %85 : vector<1x8x8xf32> to vector<8x8xf32>
    %cst_53 = arith.constant dense<0.000000e+00> : vector<8x256xf32>
    %87 = tpu.matmul %86, %84, %cst_53 {dimension_numbers = #tpu.dot_dimension_numbers<[1], [0], [0], [1], [0, 0, 1, 1], [], []>} : vector<8x8xf32>, vector<8x256xf32>, vector<8x256xf32> -> vector<8x256xf32>
    %c0_54 = arith.constant 0 : index
    %c0_55 = arith.constant 0 : index
    %88 = vector.load %arg16[%c0_54, %c0_55] : memref<8x256xf32, #tpu.memory_space<vmem>>, vector<8x256xf32>
    %89 = arith.addf %88, %87 : vector<8x256xf32>
    %c0_56 = arith.constant 0 : index
    %c0_57 = arith.constant 0 : index
    %90 = vector.load %arg16[%c0_56, %c0_57] : memref<8x256xf32, #tpu.memory_space<vmem>>, vector<8x256xf32>
    tpu.vector_store %arg16[%c0_56, %c0_57], %89 {strides = array<i32>} : memref<8x256xf32, #tpu.memory_space<vmem>>, vector<8x256xf32>,
    %c0_58 = arith.constant 0 : index
    %c113 = arith.constant 113 : index
    %91 = vector.load %arg14[%c0_58, %c113] : memref<8x512xf32, #tpu.memory_space<vmem>>, vector<8x256xf32>
    %cst_59 = arith.constant 0.000000e+00 : f32
    %92 = vector.shape_cast %53 : vector<1x256xi1> to vector<1x256xi1>
    %93 = vector.broadcast %92 : vector<1x256xi1> to vector<8x256xi1>
    %94 = vector.broadcast %cst_59 : f32 to vector<8x256xf32>
    %95 = arith.select %93, %91, %94 : vector<8x256xi1>, vector<8x256xf32>
    %c2 = arith.constant 2 : index
    %c0_60 = arith.constant 0 : index
    %c0_61 = arith.constant 0 : index
    %96 = vector.load %arg6[%c2, %c0_60, %c0_61] : memref<9x8x8xf32, #tpu.memory_space<vmem>>, vector<1x8x8xf32>
    %97 = vector.shape_cast %96 : vector<1x8x8xf32> to vector<8x8xf32>
    %cst_62 = arith.constant dense<0.000000e+00> : vector<8x256xf32>
    %98 = tpu.matmul %97, %95, %cst_62 {dimension_numbers = #tpu.dot_dimension_numbers<[1], [0], [0], [1], [0, 0, 1, 1], [], []>} : vector<8x8xf32>, vector<8x256xf32>, vector<8x256xf32> -> vector<8x256xf32>
    %c0_63 = arith.constant 0 : index
    %c0_64 = arith.constant 0 : index
    %99 = vector.load %arg16[%c0_63, %c0_64] : memref<8x256xf32, #tpu.memory_space<vmem>>, vector<8x256xf32>
    %100 = arith.addf %99, %98 : vector<8x256xf32>
    %c0_65 = arith.constant 0 : index
    %c0_66 = arith.constant 0 : index
    %101 = vector.load %arg16[%c0_65, %c0_66] : memref<8x256xf32, #tpu.memory_space<vmem>>, vector<8x256xf32>
    tpu.vector_store %arg16[%c0_65, %c0_66], %100 {strides = array<i32>} : memref<8x256xf32, #tpu.memory_space<vmem>>, vector<8x256xf32>,
    %c0_67 = arith.constant 0 : index
    %c127 = arith.constant 127 : index
    %102 = vector.load %arg14[%c0_67, %c127] : memref<8x512xf32, #tpu.memory_space<vmem>>, vector<8x256xf32>
    %cst_68 = arith.constant 0.000000e+00 : f32
    %103 = vector.shape_cast %51 : vector<1x256xi1> to vector<1x256xi1>
    %104 = vector.broadcast %103 : vector<1x256xi1> to vector<8x256xi1>
    %105 = vector.broadcast %cst_68 : f32 to vector<8x256xf32>
    %106 = arith.select %104, %102, %105 : vector<8x256xi1>, vector<8x256xf32>
    %c3 = arith.constant 3 : index
    %c0_69 = arith.constant 0 : index
    %c0_70 = arith.constant 0 : index
    %107 = vector.load %arg6[%c3, %c0_69, %c0_70] : memref<9x8x8xf32, #tpu.memory_space<vmem>>, vector<1x8x8xf32>
    %108 = vector.shape_cast %107 : vector<1x8x8xf32> to vector<8x8xf32>
    %cst_71 = arith.constant dense<0.000000e+00> : vector<8x256xf32>
    %109 = tpu.matmul %108, %106, %cst_71 {dimension_numbers = #tpu.dot_dimension_numbers<[1], [0], [0], [1], [0, 0, 1, 1], [], []>} : vector<8x8xf32>, vector<8x256xf32>, vector<8x256xf32> -> vector<8x256xf32>
    %c0_72 = arith.constant 0 : index
    %c0_73 = arith.constant 0 : index
    %110 = vector.load %arg16[%c0_72, %c0_73] : memref<8x256xf32, #tpu.memory_space<vmem>>, vector<8x256xf32>
    %111 = arith.addf %110, %109 : vector<8x256xf32>
    %c0_74 = arith.constant 0 : index
    %c0_75 = arith.constant 0 : index
    %112 = vector.load %arg16[%c0_74, %c0_75] : memref<8x256xf32, #tpu.memory_space<vmem>>, vector<8x256xf32>
    tpu.vector_store %arg16[%c0_74, %c0_75], %111 {strides = array<i32>} : memref<8x256xf32, #tpu.memory_space<vmem>>, vector<8x256xf32>,
    %c0_76 = arith.constant 0 : index
    %c128_77 = arith.constant 128 : index
    %113 = vector.load %arg14[%c0_76, %c128_77] : memref<8x512xf32, #tpu.memory_space<vmem>>, vector<8x256xf32>
    %c4_78 = arith.constant 4 : index
    %c0_79 = arith.constant 0 : index
    %c0_80 = arith.constant 0 : index
    %114 = vector.load %arg6[%c4_78, %c0_79, %c0_80] : memref<9x8x8xf32, #tpu.memory_space<vmem>>, vector<1x8x8xf32>
    %115 = vector.shape_cast %114 : vector<1x8x8xf32> to vector<8x8xf32>
    %cst_81 = arith.constant dense<0.000000e+00> : vector<8x256xf32>
    %116 = tpu.matmul %115, %113, %cst_81 {dimension_numbers = #tpu.dot_dimension_numbers<[1], [0], [0], [1], [0, 0, 1, 1], [], []>} : vector<8x8xf32>, vector<8x256xf32>, vector<8x256xf32> -> vector<8x256xf32>
    %c0_82 = arith.constant 0 : index
    %c0_83 = arith.constant 0 : index
    %117 = vector.load %arg16[%c0_82, %c0_83] : memref<8x256xf32, #tpu.memory_space<vmem>>, vector<8x256xf32>
    %118 = arith.addf %117, %116 : vector<8x256xf32>
    %c0_84 = arith.constant 0 : index
    %c0_85 = arith.constant 0 : index
    %119 = vector.load %arg16[%c0_84, %c0_85] : memref<8x256xf32, #tpu.memory_space<vmem>>, vector<8x256xf32>
    tpu.vector_store %arg16[%c0_84, %c0_85], %118 {strides = array<i32>} : memref<8x256xf32, #tpu.memory_space<vmem>>, vector<8x256xf32>,
    %c0_86 = arith.constant 0 : index
    %c129 = arith.constant 129 : index
    %120 = vector.load %arg14[%c0_86, %c129] : memref<8x512xf32, #tpu.memory_space<vmem>>, vector<8x256xf32>
    %cst_87 = arith.constant 0.000000e+00 : f32
    %121 = vector.shape_cast %53 : vector<1x256xi1> to vector<1x256xi1>
    %122 = vector.broadcast %121 : vector<1x256xi1> to vector<8x256xi1>
    %123 = vector.broadcast %cst_87 : f32 to vector<8x256xf32>
    %124 = arith.select %122, %120, %123 : vector<8x256xi1>, vector<8x256xf32>
    %c5 = arith.constant 5 : index
    %c0_88 = arith.constant 0 : index
    %c0_89 = arith.constant 0 : index
    %125 = vector.load %arg6[%c5, %c0_88, %c0_89] : memref<9x8x8xf32, #tpu.memory_space<vmem>>, vector<1x8x8xf32>
    %126 = vector.shape_cast %125 : vector<1x8x8xf32> to vector<8x8xf32>
    %cst_90 = arith.constant dense<0.000000e+00> : vector<8x256xf32>
    %127 = tpu.matmul %126, %124, %cst_90 {dimension_numbers = #tpu.dot_dimension_numbers<[1], [0], [0], [1], [0, 0, 1, 1], [], []>} : vector<8x8xf32>, vector<8x256xf32>, vector<8x256xf32> -> vector<8x256xf32>
    %c0_91 = arith.constant 0 : index
    %c0_92 = arith.constant 0 : index
    %128 = vector.load %arg16[%c0_91, %c0_92] : memref<8x256xf32, #tpu.memory_space<vmem>>, vector<8x256xf32>
    %129 = arith.addf %128, %127 : vector<8x256xf32>
    %c0_93 = arith.constant 0 : index
    %c0_94 = arith.constant 0 : index
    %130 = vector.load %arg16[%c0_93, %c0_94] : memref<8x256xf32, #tpu.memory_space<vmem>>, vector<8x256xf32>
    tpu.vector_store %arg16[%c0_93, %c0_94], %129 {strides = array<i32>} : memref<8x256xf32, #tpu.memory_space<vmem>>, vector<8x256xf32>,
    %c0_95 = arith.constant 0 : index
    %c143 = arith.constant 143 : index
    %131 = vector.load %arg14[%c0_95, %c143] : memref<8x512xf32, #tpu.memory_space<vmem>>, vector<8x256xf32>
    %cst_96 = arith.constant 0.000000e+00 : f32
    %132 = vector.shape_cast %51 : vector<1x256xi1> to vector<1x256xi1>
    %133 = vector.broadcast %132 : vector<1x256xi1> to vector<8x256xi1>
    %134 = vector.broadcast %cst_96 : f32 to vector<8x256xf32>
    %135 = arith.select %133, %131, %134 : vector<8x256xi1>, vector<8x256xf32>
    %c6 = arith.constant 6 : index
    %c0_97 = arith.constant 0 : index
    %c0_98 = arith.constant 0 : index
    %136 = vector.load %arg6[%c6, %c0_97, %c0_98] : memref<9x8x8xf32, #tpu.memory_space<vmem>>, vector<1x8x8xf32>
    %137 = vector.shape_cast %136 : vector<1x8x8xf32> to vector<8x8xf32>
    %cst_99 = arith.constant dense<0.000000e+00> : vector<8x256xf32>
    %138 = tpu.matmul %137, %135, %cst_99 {dimension_numbers = #tpu.dot_dimension_numbers<[1], [0], [0], [1], [0, 0, 1, 1], [], []>} : vector<8x8xf32>, vector<8x256xf32>, vector<8x256xf32> -> vector<8x256xf32>
    %c0_100 = arith.constant 0 : index
    %c0_101 = arith.constant 0 : index
    %139 = vector.load %arg16[%c0_100, %c0_101] : memref<8x256xf32, #tpu.memory_space<vmem>>, vector<8x256xf32>
    %140 = arith.addf %139, %138 : vector<8x256xf32>
    %c0_102 = arith.constant 0 : index
    %c0_103 = arith.constant 0 : index
    %141 = vector.load %arg16[%c0_102, %c0_103] : memref<8x256xf32, #tpu.memory_space<vmem>>, vector<8x256xf32>
    tpu.vector_store %arg16[%c0_102, %c0_103], %140 {strides = array<i32>} : memref<8x256xf32, #tpu.memory_space<vmem>>, vector<8x256xf32>,
    %c0_104 = arith.constant 0 : index
    %c144 = arith.constant 144 : index
    %142 = vector.load %arg14[%c0_104, %c144] : memref<8x512xf32, #tpu.memory_space<vmem>>, vector<8x256xf32>
    %c7 = arith.constant 7 : index
    %c0_105 = arith.constant 0 : index
    %c0_106 = arith.constant 0 : index
    %143 = vector.load %arg6[%c7, %c0_105, %c0_106] : memref<9x8x8xf32, #tpu.memory_space<vmem>>, vector<1x8x8xf32>
    %144 = vector.shape_cast %143 : vector<1x8x8xf32> to vector<8x8xf32>
    %cst_107 = arith.constant dense<0.000000e+00> : vector<8x256xf32>
    %145 = tpu.matmul %144, %142, %cst_107 {dimension_numbers = #tpu.dot_dimension_numbers<[1], [0], [0], [1], [0, 0, 1, 1], [], []>} : vector<8x8xf32>, vector<8x256xf32>, vector<8x256xf32> -> vector<8x256xf32>
    %c0_108 = arith.constant 0 : index
    %c0_109 = arith.constant 0 : index
    %146 = vector.load %arg16[%c0_108, %c0_109] : memref<8x256xf32, #tpu.memory_space<vmem>>, vector<8x256xf32>
    %147 = arith.addf %146, %145 : vector<8x256xf32>
    %c0_110 = arith.constant 0 : index
    %c0_111 = arith.constant 0 : index
    %148 = vector.load %arg16[%c0_110, %c0_111] : memref<8x256xf32, #tpu.memory_space<vmem>>, vector<8x256xf32>
    tpu.vector_store %arg16[%c0_110, %c0_111], %147 {strides = array<i32>} : memref<8x256xf32, #tpu.memory_space<vmem>>, vector<8x256xf32>,
    %c0_112 = arith.constant 0 : index
    %c145 = arith.constant 145 : index
    %149 = vector.load %arg14[%c0_112, %c145] : memref<8x512xf32, #tpu.memory_space<vmem>>, vector<8x256xf32>
    %cst_113 = arith.constant 0.000000e+00 : f32
    %150 = vector.shape_cast %53 : vector<1x256xi1> to vector<1x256xi1>
    %151 = vector.broadcast %150 : vector<1x256xi1> to vector<8x256xi1>
    %152 = vector.broadcast %cst_113 : f32 to vector<8x256xf32>
    %153 = arith.select %151, %149, %152 : vector<8x256xi1>, vector<8x256xf32>
    %c8 = arith.constant 8 : index
    %c0_114 = arith.constant 0 : index
    %c0_115 = arith.constant 0 : index
    %154 = vector.load %arg6[%c8, %c0_114, %c0_115] : memref<9x8x8xf32, #tpu.memory_space<vmem>>, vector<1x8x8xf32>
    %155 = vector.shape_cast %154 : vector<1x8x8xf32> to vector<8x8xf32>
    %cst_116 = arith.constant dense<0.000000e+00> : vector<8x256xf32>
    %156 = tpu.matmul %155, %153, %cst_116 {dimension_numbers = #tpu.dot_dimension_numbers<[1], [0], [0], [1], [0, 0, 1, 1], [], []>} : vector<8x8xf32>, vector<8x256xf32>, vector<8x256xf32> -> vector<8x256xf32>
    %c0_117 = arith.constant 0 : index
    %c0_118 = arith.constant 0 : index
    %157 = vector.load %arg16[%c0_117, %c0_118] : memref<8x256xf32, #tpu.memory_space<vmem>>, vector<8x256xf32>
    %158 = arith.addf %157, %156 : vector<8x256xf32>
    %c0_119 = arith.constant 0 : index
    %c0_120 = arith.constant 0 : index
    %159 = vector.load %arg16[%c0_119, %c0_120] : memref<8x256xf32, #tpu.memory_space<vmem>>, vector<8x256xf32>
    tpu.vector_store %arg16[%c0_119, %c0_120], %158 {strides = array<i32>} : memref<8x256xf32, #tpu.memory_space<vmem>>, vector<8x256xf32>,
    %c0_121 = arith.constant 0 : index
    %c0_122 = arith.constant 0 : index
    %160 = vector.load %arg16[%c0_121, %c0_122] : memref<8x256xf32, #tpu.memory_space<vmem>>, vector<8x256xf32>
    %c0_123 = arith.constant 0 : index
    %c0_124 = arith.constant 0 : index
    %161 = vector.load %arg7[%c0_123, %c0_124] : memref<8x1xf32, #tpu.memory_space<vmem>>, vector<8x1xf32>
    %162 = vector.broadcast %161 : vector<8x1xf32> to vector<8x256xf32>
    %163 = arith.mulf %160, %162 : vector<8x256xf32>
    %c0_125 = arith.constant 0 : index
    %c0_126 = arith.constant 0 : index
    %164 = vector.load %arg8[%c0_125, %c0_126] : memref<8x1xf32, #tpu.memory_space<vmem>>, vector<8x1xf32>
    %165 = vector.broadcast %164 : vector<8x1xf32> to vector<8x256xf32>
    %166 = arith.addf %163, %165 : vector<8x256xf32>
    %167 = vector.broadcast %32 : vector<8x1xf32> to vector<8x256xf32>
    %168 = arith.mulf %166, %167 : vector<8x256xf32>
    %c0_127 = arith.constant 0 : index
    %c0_128 = arith.constant 0 : index
    %c0_129 = arith.constant 0 : index
    %169 = vector.load %arg12[%c0_127, %c0_128, %c0_129] : memref<1x8x256xf32, #tpu.memory_space<vmem>>, vector<1x8x256xf32>
    %170 = vector.shape_cast %169 : vector<1x8x256xf32> to vector<8x256xf32>
    %171 = vector.shape_cast %168 : vector<8x256xf32> to vector<1x8x256xf32>
    tpu.vector_store %arg12[%c0_127, %c0_128, %c0_129], %171 {strides = array<i32>} : memref<1x8x256xf32, #tpu.memory_space<vmem>>, vector<1x8x256xf32>,
    %c0_130 = arith.constant 0 : index
    %c119 = arith.constant 119 : index
    %172 = vector.load %arg15[%c0_130, %c119] : memref<8x256xf32, #tpu.memory_space<vmem>>, vector<8x64xf32>
    %cst_131 = arith.constant 0.000000e+00 : f32
    %173 = vector.shape_cast %72 : vector<1x64xi1> to vector<1x64xi1>
    %174 = vector.broadcast %173 : vector<1x64xi1> to vector<8x64xi1>
    %175 = vector.broadcast %cst_131 : f32 to vector<8x64xf32>
    %176 = arith.select %174, %172, %175 : vector<8x64xi1>, vector<8x64xf32>
    %c0_132 = arith.constant 0 : index
    %c0_133 = arith.constant 0 : index
    %c0_134 = arith.constant 0 : index
    %177 = vector.load %arg9[%c0_132, %c0_133, %c0_134] : memref<16x8x8xf32, #tpu.memory_space<vmem>>, vector<1x8x8xf32>
    %178 = vector.shape_cast %177 : vector<1x8x8xf32> to vector<8x8xf32>
    %cst_135 = arith.constant dense<0.000000e+00> : vector<8x64xf32>
    %179 = tpu.matmul %178, %176, %cst_135 {dimension_numbers = #tpu.dot_dimension_numbers<[1], [0], [0], [1], [0, 0, 1, 1], [], []>} : vector<8x8xf32>, vector<8x64xf32>, vector<8x64xf32> -> vector<8x64xf32>
    %c0_136 = arith.constant 0 : index
    %c0_137 = arith.constant 0 : index
    %180 = vector.load %arg17[%c0_136, %c0_137] : memref<32x64xf32, #tpu.memory_space<vmem>>, vector<8x64xf32>
    tpu.vector_store %arg17[%c0_136, %c0_137], %179 {strides = array<i32>} : memref<32x64xf32, #tpu.memory_space<vmem>>, vector<8x64xf32>,
    %c0_138 = arith.constant 0 : index
    %c120 = arith.constant 120 : index
    %181 = vector.load %arg15[%c0_138, %c120] : memref<8x256xf32, #tpu.memory_space<vmem>>, vector<8x64xf32>
    %c1_139 = arith.constant 1 : index
    %c0_140 = arith.constant 0 : index
    %c0_141 = arith.constant 0 : index
    %182 = vector.load %arg9[%c1_139, %c0_140, %c0_141] : memref<16x8x8xf32, #tpu.memory_space<vmem>>, vector<1x8x8xf32>
    %183 = vector.shape_cast %182 : vector<1x8x8xf32> to vector<8x8xf32>
    %cst_142 = arith.constant dense<0.000000e+00> : vector<8x64xf32>
    %184 = tpu.matmul %183, %181, %cst_142 {dimension_numbers = #tpu.dot_dimension_numbers<[1], [0], [0], [1], [0, 0, 1, 1], [], []>} : vector<8x8xf32>, vector<8x64xf32>, vector<8x64xf32> -> vector<8x64xf32>
    %c0_143 = arith.constant 0 : index
    %c0_144 = arith.constant 0 : index
    %185 = vector.load %arg17[%c0_143, %c0_144] : memref<32x64xf32, #tpu.memory_space<vmem>>, vector<8x64xf32>
    %186 = arith.addf %185, %184 : vector<8x64xf32>
    %c0_145 = arith.constant 0 : index
    %c0_146 = arith.constant 0 : index
    %187 = vector.load %arg17[%c0_145, %c0_146] : memref<32x64xf32, #tpu.memory_space<vmem>>, vector<8x64xf32>
    tpu.vector_store %arg17[%c0_145, %c0_146], %186 {strides = array<i32>} : memref<32x64xf32, #tpu.memory_space<vmem>>, vector<8x64xf32>,
    %c0_147 = arith.constant 0 : index
    %c127_148 = arith.constant 127 : index
    %188 = vector.load %arg15[%c0_147, %c127_148] : memref<8x256xf32, #tpu.memory_space<vmem>>, vector<8x64xf32>
    %cst_149 = arith.constant 0.000000e+00 : f32
    %189 = vector.shape_cast %72 : vector<1x64xi1> to vector<1x64xi1>
    %190 = vector.broadcast %189 : vector<1x64xi1> to vector<8x64xi1>
    %191 = vector.broadcast %cst_149 : f32 to vector<8x64xf32>
    %192 = arith.select %190, %188, %191 : vector<8x64xi1>, vector<8x64xf32>
    %c2_150 = arith.constant 2 : index
    %c0_151 = arith.constant 0 : index
    %c0_152 = arith.constant 0 : index
    %193 = vector.load %arg9[%c2_150, %c0_151, %c0_152] : memref<16x8x8xf32, #tpu.memory_space<vmem>>, vector<1x8x8xf32>
    %194 = vector.shape_cast %193 : vector<1x8x8xf32> to vector<8x8xf32>
    %cst_153 = arith.constant dense<0.000000e+00> : vector<8x64xf32>
    %195 = tpu.matmul %194, %192, %cst_153 {dimension_numbers = #tpu.dot_dimension_numbers<[1], [0], [0], [1], [0, 0, 1, 1], [], []>} : vector<8x8xf32>, vector<8x64xf32>, vector<8x64xf32> -> vector<8x64xf32>
    %c0_154 = arith.constant 0 : index
    %c0_155 = arith.constant 0 : index
    %196 = vector.load %arg17[%c0_154, %c0_155] : memref<32x64xf32, #tpu.memory_space<vmem>>, vector<8x64xf32>
    %197 = arith.addf %196, %195 : vector<8x64xf32>
    %c0_156 = arith.constant 0 : index
    %c0_157 = arith.constant 0 : index
    %198 = vector.load %arg17[%c0_156, %c0_157] : memref<32x64xf32, #tpu.memory_space<vmem>>, vector<8x64xf32>
    tpu.vector_store %arg17[%c0_156, %c0_157], %197 {strides = array<i32>} : memref<32x64xf32, #tpu.memory_space<vmem>>, vector<8x64xf32>,
    %c0_158 = arith.constant 0 : index
    %c128_159 = arith.constant 128 : index
    %199 = vector.load %arg15[%c0_158, %c128_159] : memref<8x256xf32, #tpu.memory_space<vmem>>, vector<8x64xf32>
    %c3_160 = arith.constant 3 : index
    %c0_161 = arith.constant 0 : index
    %c0_162 = arith.constant 0 : index
    %200 = vector.load %arg9[%c3_160, %c0_161, %c0_162] : memref<16x8x8xf32, #tpu.memory_space<vmem>>, vector<1x8x8xf32>
    %201 = vector.shape_cast %200 : vector<1x8x8xf32> to vector<8x8xf32>
    %cst_163 = arith.constant dense<0.000000e+00> : vector<8x64xf32>
    %202 = tpu.matmul %201, %199, %cst_163 {dimension_numbers = #tpu.dot_dimension_numbers<[1], [0], [0], [1], [0, 0, 1, 1], [], []>} : vector<8x8xf32>, vector<8x64xf32>, vector<8x64xf32> -> vector<8x64xf32>
    %c0_164 = arith.constant 0 : index
    %c0_165 = arith.constant 0 : index
    %203 = vector.load %arg17[%c0_164, %c0_165] : memref<32x64xf32, #tpu.memory_space<vmem>>, vector<8x64xf32>
    %204 = arith.addf %203, %202 : vector<8x64xf32>
    %c0_166 = arith.constant 0 : index
    %c0_167 = arith.constant 0 : index
    %205 = vector.load %arg17[%c0_166, %c0_167] : memref<32x64xf32, #tpu.memory_space<vmem>>, vector<8x64xf32>
    tpu.vector_store %arg17[%c0_166, %c0_167], %204 {strides = array<i32>} : memref<32x64xf32, #tpu.memory_space<vmem>>, vector<8x64xf32>,
    %c0_168 = arith.constant 0 : index
    %c120_169 = arith.constant 120 : index
    %206 = vector.load %arg15[%c0_168, %c120_169] : memref<8x256xf32, #tpu.memory_space<vmem>>, vector<8x64xf32>
    %c4_170 = arith.constant 4 : index
    %c0_171 = arith.constant 0 : index
    %c0_172 = arith.constant 0 : index
    %207 = vector.load %arg9[%c4_170, %c0_171, %c0_172] : memref<16x8x8xf32, #tpu.memory_space<vmem>>, vector<1x8x8xf32>
    %208 = vector.shape_cast %207 : vector<1x8x8xf32> to vector<8x8xf32>
    %cst_173 = arith.constant dense<0.000000e+00> : vector<8x64xf32>
    %209 = tpu.matmul %208, %206, %cst_173 {dimension_numbers = #tpu.dot_dimension_numbers<[1], [0], [0], [1], [0, 0, 1, 1], [], []>} : vector<8x8xf32>, vector<8x64xf32>, vector<8x64xf32> -> vector<8x64xf32>
    %c8_174 = arith.constant 8 : index
    %c0_175 = arith.constant 0 : index
    %210 = vector.load %arg17[%c8_174, %c0_175] : memref<32x64xf32, #tpu.memory_space<vmem>>, vector<8x64xf32>
    tpu.vector_store %arg17[%c8_174, %c0_175], %209 {strides = array<i32>} : memref<32x64xf32, #tpu.memory_space<vmem>>, vector<8x64xf32>,
    %c0_176 = arith.constant 0 : index
    %c121 = arith.constant 121 : index
    %211 = vector.load %arg15[%c0_176, %c121] : memref<8x256xf32, #tpu.memory_space<vmem>>, vector<8x64xf32>
    %cst_177 = arith.constant 0.000000e+00 : f32
    %212 = vector.shape_cast %74 : vector<1x64xi1> to vector<1x64xi1>
    %213 = vector.broadcast %212 : vector<1x64xi1> to vector<8x64xi1>
    %214 = vector.broadcast %cst_177 : f32 to vector<8x64xf32>
    %215 = arith.select %213, %211, %214 : vector<8x64xi1>, vector<8x64xf32>
    %c5_178 = arith.constant 5 : index
    %c0_179 = arith.constant 0 : index
    %c0_180 = arith.constant 0 : index
    %216 = vector.load %arg9[%c5_178, %c0_179, %c0_180] : memref<16x8x8xf32, #tpu.memory_space<vmem>>, vector<1x8x8xf32>
    %217 = vector.shape_cast %216 : vector<1x8x8xf32> to vector<8x8xf32>
    %cst_181 = arith.constant dense<0.000000e+00> : vector<8x64xf32>
    %218 = tpu.matmul %217, %215, %cst_181 {dimension_numbers = #tpu.dot_dimension_numbers<[1], [0], [0], [1], [0, 0, 1, 1], [], []>} : vector<8x8xf32>, vector<8x64xf32>, vector<8x64xf32> -> vector<8x64xf32>
    %c8_182 = arith.constant 8 : index
    %c0_183 = arith.constant 0 : index
    %219 = vector.load %arg17[%c8_182, %c0_183] : memref<32x64xf32, #tpu.memory_space<vmem>>, vector<8x64xf32>
    %220 = arith.addf %219, %218 : vector<8x64xf32>
    %c8_184 = arith.constant 8 : index
    %c0_185 = arith.constant 0 : index
    %221 = vector.load %arg17[%c8_184, %c0_185] : memref<32x64xf32, #tpu.memory_space<vmem>>, vector<8x64xf32>
    tpu.vector_store %arg17[%c8_184, %c0_185], %220 {strides = array<i32>} : memref<32x64xf32, #tpu.memory_space<vmem>>, vector<8x64xf32>,
    %c0_186 = arith.constant 0 : index
    %c128_187 = arith.constant 128 : index
    %222 = vector.load %arg15[%c0_186, %c128_187] : memref<8x256xf32, #tpu.memory_space<vmem>>, vector<8x64xf32>
    %c6_188 = arith.constant 6 : index
    %c0_189 = arith.constant 0 : index
    %c0_190 = arith.constant 0 : index
    %223 = vector.load %arg9[%c6_188, %c0_189, %c0_190] : memref<16x8x8xf32, #tpu.memory_space<vmem>>, vector<1x8x8xf32>
    %224 = vector.shape_cast %223 : vector<1x8x8xf32> to vector<8x8xf32>
    %cst_191 = arith.constant dense<0.000000e+00> : vector<8x64xf32>
    %225 = tpu.matmul %224, %222, %cst_191 {dimension_numbers = #tpu.dot_dimension_numbers<[1], [0], [0], [1], [0, 0, 1, 1], [], []>} : vector<8x8xf32>, vector<8x64xf32>, vector<8x64xf32> -> vector<8x64xf32>
    %c8_192 = arith.constant 8 : index
    %c0_193 = arith.constant 0 : index
    %226 = vector.load %arg17[%c8_192, %c0_193] : memref<32x64xf32, #tpu.memory_space<vmem>>, vector<8x64xf32>
    %227 = arith.addf %226, %225 : vector<8x64xf32>
    %c8_194 = arith.constant 8 : index
    %c0_195 = arith.constant 0 : index
    %228 = vector.load %arg17[%c8_194, %c0_195] : memref<32x64xf32, #tpu.memory_space<vmem>>, vector<8x64xf32>
    tpu.vector_store %arg17[%c8_194, %c0_195], %227 {strides = array<i32>} : memref<32x64xf32, #tpu.memory_space<vmem>>, vector<8x64xf32>,
    %c0_196 = arith.constant 0 : index
    %c129_197 = arith.constant 129 : index
    %229 = vector.load %arg15[%c0_196, %c129_197] : memref<8x256xf32, #tpu.memory_space<vmem>>, vector<8x64xf32>
    %cst_198 = arith.constant 0.000000e+00 : f32
    %230 = vector.shape_cast %74 : vector<1x64xi1> to vector<1x64xi1>
    %231 = vector.broadcast %230 : vector<1x64xi1> to vector<8x64xi1>
    %232 = vector.broadcast %cst_198 : f32 to vector<8x64xf32>
    %233 = arith.select %231, %229, %232 : vector<8x64xi1>, vector<8x64xf32>
    %c7_199 = arith.constant 7 : index
    %c0_200 = arith.constant 0 : index
    %c0_201 = arith.constant 0 : index
    %234 = vector.load %arg9[%c7_199, %c0_200, %c0_201] : memref<16x8x8xf32, #tpu.memory_space<vmem>>, vector<1x8x8xf32>
    %235 = vector.shape_cast %234 : vector<1x8x8xf32> to vector<8x8xf32>
    %cst_202 = arith.constant dense<0.000000e+00> : vector<8x64xf32>
    %236 = tpu.matmul %235, %233, %cst_202 {dimension_numbers = #tpu.dot_dimension_numbers<[1], [0], [0], [1], [0, 0, 1, 1], [], []>} : vector<8x8xf32>, vector<8x64xf32>, vector<8x64xf32> -> vector<8x64xf32>
    %c8_203 = arith.constant 8 : index
    %c0_204 = arith.constant 0 : index
    %237 = vector.load %arg17[%c8_203, %c0_204] : memref<32x64xf32, #tpu.memory_space<vmem>>, vector<8x64xf32>
    %238 = arith.addf %237, %236 : vector<8x64xf32>
    %c8_205 = arith.constant 8 : index
    %c0_206 = arith.constant 0 : index
    %239 = vector.load %arg17[%c8_205, %c0_206] : memref<32x64xf32, #tpu.memory_space<vmem>>, vector<8x64xf32>
    tpu.vector_store %arg17[%c8_205, %c0_206], %238 {strides = array<i32>} : memref<32x64xf32, #tpu.memory_space<vmem>>, vector<8x64xf32>,
    %c0_207 = arith.constant 0 : index
    %c127_208 = arith.constant 127 : index
    %240 = vector.load %arg15[%c0_207, %c127_208] : memref<8x256xf32, #tpu.memory_space<vmem>>, vector<8x64xf32>
    %cst_209 = arith.constant 0.000000e+00 : f32
    %241 = vector.shape_cast %72 : vector<1x64xi1> to vector<1x64xi1>
    %242 = vector.broadcast %241 : vector<1x64xi1> to vector<8x64xi1>
    %243 = vector.broadcast %cst_209 : f32 to vector<8x64xf32>
    %244 = arith.select %242, %240, %243 : vector<8x64xi1>, vector<8x64xf32>
    %c8_210 = arith.constant 8 : index
    %c0_211 = arith.constant 0 : index
    %c0_212 = arith.constant 0 : index
    %245 = vector.load %arg9[%c8_210, %c0_211, %c0_212] : memref<16x8x8xf32, #tpu.memory_space<vmem>>, vector<1x8x8xf32>
    %246 = vector.shape_cast %245 : vector<1x8x8xf32> to vector<8x8xf32>
    %cst_213 = arith.constant dense<0.000000e+00> : vector<8x64xf32>
    %247 = tpu.matmul %246, %244, %cst_213 {dimension_numbers = #tpu.dot_dimension_numbers<[1], [0], [0], [1], [0, 0, 1, 1], [], []>} : vector<8x8xf32>, vector<8x64xf32>, vector<8x64xf32> -> vector<8x64xf32>
    %c16 = arith.constant 16 : index
    %c0_214 = arith.constant 0 : index
    %248 = vector.load %arg17[%c16, %c0_214] : memref<32x64xf32, #tpu.memory_space<vmem>>, vector<8x64xf32>
    tpu.vector_store %arg17[%c16, %c0_214], %247 {strides = array<i32>} : memref<32x64xf32, #tpu.memory_space<vmem>>, vector<8x64xf32>,
    %c0_215 = arith.constant 0 : index
    %c128_216 = arith.constant 128 : index
    %249 = vector.load %arg15[%c0_215, %c128_216] : memref<8x256xf32, #tpu.memory_space<vmem>>, vector<8x64xf32>
    %c9 = arith.constant 9 : index
    %c0_217 = arith.constant 0 : index
    %c0_218 = arith.constant 0 : index
    %250 = vector.load %arg9[%c9, %c0_217, %c0_218] : memref<16x8x8xf32, #tpu.memory_space<vmem>>, vector<1x8x8xf32>
    %251 = vector.shape_cast %250 : vector<1x8x8xf32> to vector<8x8xf32>
    %cst_219 = arith.constant dense<0.000000e+00> : vector<8x64xf32>
    %252 = tpu.matmul %251, %249, %cst_219 {dimension_numbers = #tpu.dot_dimension_numbers<[1], [0], [0], [1], [0, 0, 1, 1], [], []>} : vector<8x8xf32>, vector<8x64xf32>, vector<8x64xf32> -> vector<8x64xf32>
    %c16_220 = arith.constant 16 : index
    %c0_221 = arith.constant 0 : index
    %253 = vector.load %arg17[%c16_220, %c0_221] : memref<32x64xf32, #tpu.memory_space<vmem>>, vector<8x64xf32>
    %254 = arith.addf %253, %252 : vector<8x64xf32>
    %c16_222 = arith.constant 16 : index
    %c0_223 = arith.constant 0 : index
    %255 = vector.load %arg17[%c16_222, %c0_223] : memref<32x64xf32, #tpu.memory_space<vmem>>, vector<8x64xf32>
    tpu.vector_store %arg17[%c16_222, %c0_223], %254 {strides = array<i32>} : memref<32x64xf32, #tpu.memory_space<vmem>>, vector<8x64xf32>,
    %c0_224 = arith.constant 0 : index
    %c135 = arith.constant 135 : index
    %256 = vector.load %arg15[%c0_224, %c135] : memref<8x256xf32, #tpu.memory_space<vmem>>, vector<8x64xf32>
    %cst_225 = arith.constant 0.000000e+00 : f32
    %257 = vector.shape_cast %72 : vector<1x64xi1> to vector<1x64xi1>
    %258 = vector.broadcast %257 : vector<1x64xi1> to vector<8x64xi1>
    %259 = vector.broadcast %cst_225 : f32 to vector<8x64xf32>
    %260 = arith.select %258, %256, %259 : vector<8x64xi1>, vector<8x64xf32>
    %c10 = arith.constant 10 : index
    %c0_226 = arith.constant 0 : index
    %c0_227 = arith.constant 0 : index
    %261 = vector.load %arg9[%c10, %c0_226, %c0_227] : memref<16x8x8xf32, #tpu.memory_space<vmem>>, vector<1x8x8xf32>
    %262 = vector.shape_cast %261 : vector<1x8x8xf32> to vector<8x8xf32>
    %cst_228 = arith.constant dense<0.000000e+00> : vector<8x64xf32>
    %263 = tpu.matmul %262, %260, %cst_228 {dimension_numbers = #tpu.dot_dimension_numbers<[1], [0], [0], [1], [0, 0, 1, 1], [], []>} : vector<8x8xf32>, vector<8x64xf32>, vector<8x64xf32> -> vector<8x64xf32>
    %c16_229 = arith.constant 16 : index
    %c0_230 = arith.constant 0 : index
    %264 = vector.load %arg17[%c16_229, %c0_230] : memref<32x64xf32, #tpu.memory_space<vmem>>, vector<8x64xf32>
    %265 = arith.addf %264, %263 : vector<8x64xf32>
    %c16_231 = arith.constant 16 : index
    %c0_232 = arith.constant 0 : index
    %266 = vector.load %arg17[%c16_231, %c0_232] : memref<32x64xf32, #tpu.memory_space<vmem>>, vector<8x64xf32>
    tpu.vector_store %arg17[%c16_231, %c0_232], %265 {strides = array<i32>} : memref<32x64xf32, #tpu.memory_space<vmem>>, vector<8x64xf32>,
    %c0_233 = arith.constant 0 : index
    %c136 = arith.constant 136 : index
    %267 = vector.load %arg15[%c0_233, %c136] : memref<8x256xf32, #tpu.memory_space<vmem>>, vector<8x64xf32>
    %c11 = arith.constant 11 : index
    %c0_234 = arith.constant 0 : index
    %c0_235 = arith.constant 0 : index
    %268 = vector.load %arg9[%c11, %c0_234, %c0_235] : memref<16x8x8xf32, #tpu.memory_space<vmem>>, vector<1x8x8xf32>
    %269 = vector.shape_cast %268 : vector<1x8x8xf32> to vector<8x8xf32>
    %cst_236 = arith.constant dense<0.000000e+00> : vector<8x64xf32>
    %270 = tpu.matmul %269, %267, %cst_236 {dimension_numbers = #tpu.dot_dimension_numbers<[1], [0], [0], [1], [0, 0, 1, 1], [], []>} : vector<8x8xf32>, vector<8x64xf32>, vector<8x64xf32> -> vector<8x64xf32>
    %c16_237 = arith.constant 16 : index
    %c0_238 = arith.constant 0 : index
    %271 = vector.load %arg17[%c16_237, %c0_238] : memref<32x64xf32, #tpu.memory_space<vmem>>, vector<8x64xf32>
    %272 = arith.addf %271, %270 : vector<8x64xf32>
    %c16_239 = arith.constant 16 : index
    %c0_240 = arith.constant 0 : index
    %273 = vector.load %arg17[%c16_239, %c0_240] : memref<32x64xf32, #tpu.memory_space<vmem>>, vector<8x64xf32>
    tpu.vector_store %arg17[%c16_239, %c0_240], %272 {strides = array<i32>} : memref<32x64xf32, #tpu.memory_space<vmem>>, vector<8x64xf32>,
    %c0_241 = arith.constant 0 : index
    %c128_242 = arith.constant 128 : index
    %274 = vector.load %arg15[%c0_241, %c128_242] : memref<8x256xf32, #tpu.memory_space<vmem>>, vector<8x64xf32>
    %c12 = arith.constant 12 : index
    %c0_243 = arith.constant 0 : index
    %c0_244 = arith.constant 0 : index
    %275 = vector.load %arg9[%c12, %c0_243, %c0_244] : memref<16x8x8xf32, #tpu.memory_space<vmem>>, vector<1x8x8xf32>
    %276 = vector.shape_cast %275 : vector<1x8x8xf32> to vector<8x8xf32>
    %cst_245 = arith.constant dense<0.000000e+00> : vector<8x64xf32>
    %277 = tpu.matmul %276, %274, %cst_245 {dimension_numbers = #tpu.dot_dimension_numbers<[1], [0], [0], [1], [0, 0, 1, 1], [], []>} : vector<8x8xf32>, vector<8x64xf32>, vector<8x64xf32> -> vector<8x64xf32>
    %c24 = arith.constant 24 : index
    %c0_246 = arith.constant 0 : index
    %278 = vector.load %arg17[%c24, %c0_246] : memref<32x64xf32, #tpu.memory_space<vmem>>, vector<8x64xf32>
    tpu.vector_store %arg17[%c24, %c0_246], %277 {strides = array<i32>} : memref<32x64xf32, #tpu.memory_space<vmem>>, vector<8x64xf32>,
    %c0_247 = arith.constant 0 : index
    %c129_248 = arith.constant 129 : index
    %279 = vector.load %arg15[%c0_247, %c129_248] : memref<8x256xf32, #tpu.memory_space<vmem>>, vector<8x64xf32>
    %cst_249 = arith.constant 0.000000e+00 : f32
    %280 = vector.shape_cast %74 : vector<1x64xi1> to vector<1x64xi1>
    %281 = vector.broadcast %280 : vector<1x64xi1> to vector<8x64xi1>
    %282 = vector.broadcast %cst_249 : f32 to vector<8x64xf32>
    %283 = arith.select %281, %279, %282 : vector<8x64xi1>, vector<8x64xf32>
    %c13 = arith.constant 13 : index
    %c0_250 = arith.constant 0 : index
    %c0_251 = arith.constant 0 : index
    %284 = vector.load %arg9[%c13, %c0_250, %c0_251] : memref<16x8x8xf32, #tpu.memory_space<vmem>>, vector<1x8x8xf32>
    %285 = vector.shape_cast %284 : vector<1x8x8xf32> to vector<8x8xf32>
    %cst_252 = arith.constant dense<0.000000e+00> : vector<8x64xf32>
    %286 = tpu.matmul %285, %283, %cst_252 {dimension_numbers = #tpu.dot_dimension_numbers<[1], [0], [0], [1], [0, 0, 1, 1], [], []>} : vector<8x8xf32>, vector<8x64xf32>, vector<8x64xf32> -> vector<8x64xf32>
    %c24_253 = arith.constant 24 : index
    %c0_254 = arith.constant 0 : index
    %287 = vector.load %arg17[%c24_253, %c0_254] : memref<32x64xf32, #tpu.memory_space<vmem>>, vector<8x64xf32>
    %288 = arith.addf %287, %286 : vector<8x64xf32>
    %c24_255 = arith.constant 24 : index
    %c0_256 = arith.constant 0 : index
    %289 = vector.load %arg17[%c24_255, %c0_256] : memref<32x64xf32, #tpu.memory_space<vmem>>, vector<8x64xf32>
    tpu.vector_store %arg17[%c24_255, %c0_256], %288 {strides = array<i32>} : memref<32x64xf32, #tpu.memory_space<vmem>>, vector<8x64xf32>,
    %c0_257 = arith.constant 0 : index
    %c136_258 = arith.constant 136 : index
    %290 = vector.load %arg15[%c0_257, %c136_258] : memref<8x256xf32, #tpu.memory_space<vmem>>, vector<8x64xf32>
    %c14 = arith.constant 14 : index
    %c0_259 = arith.constant 0 : index
    %c0_260 = arith.constant 0 : index
    %291 = vector.load %arg9[%c14, %c0_259, %c0_260] : memref<16x8x8xf32, #tpu.memory_space<vmem>>, vector<1x8x8xf32>
    %292 = vector.shape_cast %291 : vector<1x8x8xf32> to vector<8x8xf32>
    %cst_261 = arith.constant dense<0.000000e+00> : vector<8x64xf32>
    %293 = tpu.matmul %292, %290, %cst_261 {dimension_numbers = #tpu.dot_dimension_numbers<[1], [0], [0], [1], [0, 0, 1, 1], [], []>} : vector<8x8xf32>, vector<8x64xf32>, vector<8x64xf32> -> vector<8x64xf32>
    %c24_262 = arith.constant 24 : index
    %c0_263 = arith.constant 0 : index
    %294 = vector.load %arg17[%c24_262, %c0_263] : memref<32x64xf32, #tpu.memory_space<vmem>>, vector<8x64xf32>
    %295 = arith.addf %294, %293 : vector<8x64xf32>
    %c24_264 = arith.constant 24 : index
    %c0_265 = arith.constant 0 : index
    %296 = vector.load %arg17[%c24_264, %c0_265] : memref<32x64xf32, #tpu.memory_space<vmem>>, vector<8x64xf32>
    tpu.vector_store %arg17[%c24_264, %c0_265], %295 {strides = array<i32>} : memref<32x64xf32, #tpu.memory_space<vmem>>, vector<8x64xf32>,
    %c0_266 = arith.constant 0 : index
    %c137 = arith.constant 137 : index
    %297 = vector.load %arg15[%c0_266, %c137] : memref<8x256xf32, #tpu.memory_space<vmem>>, vector<8x64xf32>
    %cst_267 = arith.constant 0.000000e+00 : f32
    %298 = vector.shape_cast %74 : vector<1x64xi1> to vector<1x64xi1>
    %299 = vector.broadcast %298 : vector<1x64xi1> to vector<8x64xi1>
    %300 = vector.broadcast %cst_267 : f32 to vector<8x64xf32>
    %301 = arith.select %299, %297, %300 : vector<8x64xi1>, vector<8x64xf32>
    %c15 = arith.constant 15 : index
    %c0_268 = arith.constant 0 : index
    %c0_269 = arith.constant 0 : index
    %302 = vector.load %arg9[%c15, %c0_268, %c0_269] : memref<16x8x8xf32, #tpu.memory_space<vmem>>, vector<1x8x8xf32>
    %303 = vector.shape_cast %302 : vector<1x8x8xf32> to vector<8x8xf32>
    %cst_270 = arith.constant dense<0.000000e+00> : vector<8x64xf32>
    %304 = tpu.matmul %303, %301, %cst_270 {dimension_numbers = #tpu.dot_dimension_numbers<[1], [0], [0], [1], [0, 0, 1, 1], [], []>} : vector<8x8xf32>, vector<8x64xf32>, vector<8x64xf32> -> vector<8x64xf32>
    %c24_271 = arith.constant 24 : index
    %c0_272 = arith.constant 0 : index
    %305 = vector.load %arg17[%c24_271, %c0_272] : memref<32x64xf32, #tpu.memory_space<vmem>>, vector<8x64xf32>
    %306 = arith.addf %305, %304 : vector<8x64xf32>
    %c24_273 = arith.constant 24 : index
    %c0_274 = arith.constant 0 : index
    %307 = vector.load %arg17[%c24_273, %c0_274] : memref<32x64xf32, #tpu.memory_space<vmem>>, vector<8x64xf32>
    tpu.vector_store %arg17[%c24_273, %c0_274], %306 {strides = array<i32>} : memref<32x64xf32, #tpu.memory_space<vmem>>, vector<8x64xf32>,
    %c0_275 = arith.constant 0 : index
    %c0_276 = arith.constant 0 : index
    %308 = vector.load %arg17[%c0_275, %c0_276] : memref<32x64xf32, #tpu.memory_space<vmem>>, vector<32x64xf32>
    %c0_277 = arith.constant 0 : index
    %c0_278 = arith.constant 0 : index
    %309 = vector.load %arg10[%c0_277, %c0_278] : memref<32x1xf32, #tpu.memory_space<vmem>>, vector<32x1xf32>
    %310 = vector.broadcast %309 : vector<32x1xf32> to vector<32x64xf32>
    %311 = arith.mulf %308, %310 : vector<32x64xf32>
    %c0_279 = arith.constant 0 : index
    %c0_280 = arith.constant 0 : index
    %312 = vector.load %arg11[%c0_279, %c0_280] : memref<32x1xf32, #tpu.memory_space<vmem>>, vector<32x1xf32>
    %313 = vector.broadcast %312 : vector<32x1xf32> to vector<32x64xf32>
    %314 = arith.addf %311, %313 : vector<32x64xf32>
    %cst_281 = arith.constant 0.000000e+00 : f32
    %315 = vector.broadcast %cst_281 : f32 to vector<32x64xf32>
    %316 = arith.maximumf %314, %315 : vector<32x64xf32>
    %c0_282 = arith.constant 0 : index
    %c0_283 = arith.constant 0 : index
    %c0_284 = arith.constant 0 : index
    %317 = vector.load %arg13[%c0_282, %c0_283, %c0_284] : memref<1x32x64xf32, #tpu.memory_space<vmem>>, vector<1x32x64xf32>
    %318 = vector.shape_cast %317 : vector<1x32x64xf32> to vector<32x64xf32>
    %319 = vector.shape_cast %316 : vector<32x64xf32> to vector<1x32x64xf32>
    tpu.vector_store %arg13[%c0_282, %c0_283, %c0_284], %319 {strides = array<i32>} : memref<1x32x64xf32, #tpu.memory_space<vmem>>, vector<1x32x64xf32>,
    return
  }
  func.func @transform_0(%arg0: i32) -> (i32, i32, i32) {
    %c0_i32 = arith.constant 0 : i32
    %c0_i32_0 = arith.constant 0 : i32
    %c0_i32_1 = arith.constant 0 : i32
    return %arg0, %c0_i32, %c0_i32_0 : i32, i32, i32
  }
  func.func @transform_1(%arg0: i32) -> (i32, i32, i32) {
    %c0_i32 = arith.constant 0 : i32
    %c0_i32_0 = arith.constant 0 : i32
    %c0_i32_1 = arith.constant 0 : i32
    return %arg0, %c0_i32, %c0_i32_0 : i32, i32, i32
  }
  func.func @transform_2(%arg0: i32) -> (i32, i32) {
    %c0_i32 = arith.constant 0 : i32
    %c0_i32_0 = arith.constant 0 : i32
    %c0_i32_1 = arith.constant 0 : i32
    return %c0_i32, %c0_i32_0 : i32, i32
  }
  func.func @transform_3(%arg0: i32) -> (i32, i32) {
    %c0_i32 = arith.constant 0 : i32
    %c0_i32_0 = arith.constant 0 : i32
    %c0_i32_1 = arith.constant 0 : i32
    return %c0_i32, %c0_i32_0 : i32, i32
  }
  func.func @transform_4(%arg0: i32) -> (i32, i32) {
    %c0_i32 = arith.constant 0 : i32
    %c0_i32_0 = arith.constant 0 : i32
    %c0_i32_1 = arith.constant 0 : i32
    return %c0_i32, %c0_i32_0 : i32, i32
  }
  func.func @transform_5(%arg0: i32) -> (i32, i32, i32) {
    %c0_i32 = arith.constant 0 : i32
    %c0_i32_0 = arith.constant 0 : i32
    %c0_i32_1 = arith.constant 0 : i32
    %c0_i32_2 = arith.constant 0 : i32
    return %c0_i32, %c0_i32_0, %c0_i32_1 : i32, i32, i32
  }
  func.func @transform_6(%arg0: i32) -> (i32, i32) {
    %c0_i32 = arith.constant 0 : i32
    %c0_i32_0 = arith.constant 0 : i32
    %c0_i32_1 = arith.constant 0 : i32
    return %c0_i32, %c0_i32_0 : i32, i32
  }
  func.func @transform_7(%arg0: i32) -> (i32, i32) {
    %c0_i32 = arith.constant 0 : i32
    %c0_i32_0 = arith.constant 0 : i32
    %c0_i32_1 = arith.constant 0 : i32
    return %c0_i32, %c0_i32_0 : i32, i32
  }
  func.func @transform_8(%arg0: i32) -> (i32, i32, i32) {
    %c0_i32 = arith.constant 0 : i32
    %c0_i32_0 = arith.constant 0 : i32
    %c0_i32_1 = arith.constant 0 : i32
    %c0_i32_2 = arith.constant 0 : i32
    return %c0_i32, %c0_i32_0, %c0_i32_1 : i32, i32, i32
  }
  func.func @transform_9(%arg0: i32) -> (i32, i32) {
    %c0_i32 = arith.constant 0 : i32
    %c0_i32_0 = arith.constant 0 : i32
    %c0_i32_1 = arith.constant 0 : i32
    return %c0_i32, %c0_i32_0 : i32, i32
  }
  func.func @transform_10(%arg0: i32) -> (i32, i32) {
    %c0_i32 = arith.constant 0 : i32
    %c0_i32_0 = arith.constant 0 : i32
    %c0_i32_1 = arith.constant 0 : i32
    return %c0_i32, %c0_i32_0 : i32, i32
  }
  func.func @transform_11(%arg0: i32) -> (i32, i32, i32) {
    %c0_i32 = arith.constant 0 : i32
    %c0_i32_0 = arith.constant 0 : i32
    %c0_i32_1 = arith.constant 0 : i32
    return %arg0, %c0_i32, %c0_i32_0 : i32, i32, i32
  }
  func.func @transform_12(%arg0: i32) -> (i32, i32, i32) {
    %c0_i32 = arith.constant 0 : i32
    %c0_i32_0 = arith.constant 0 : i32
    %c0_i32_1 = arith.constant 0 : i32
    return %arg0, %c0_i32, %c0_i32_0 : i32, i32, i32
  }
}

</mosaic_0001>

<bundles_post_ra>
// kernel: tpu_custom_call.1
= control target key start
LH: loop header
LB: loop body
LE: loop exit
PB: predicated region body
PF: predicated region fallthrough
CT: control target
= control target key end

     0   :  { %s4077_s0 = inlined_call_operand.vmem [shape: f32[2,8,64], index: 0, kind: input, shape index: {}]   ;;  %s4078_s1 = inlined_call_operand.vmem [shape: f32[2,4,256], index: 1, kind: input, shape index: {}]   ;;  %s4079_s2 = inlined_call_operand.vmem [shape: f32[8,8], index: 2, kind: input, shape index: {}]   ;;  %s4080_s3 = inlined_call_operand.vmem [shape: f32[8,1], index: 3, kind: input, shape index: {}]   ;;  %s4081_s4 = inlined_call_operand.vmem [shape: f32[8,1], index: 4, kind: input, shape index: {}]   ;;  %s4082_s5 = inlined_call_operand.vmem [shape: f32[9,8,8], index: 5, kind: input, shape index: {}]   ;;  %s4083_s6 = inlined_call_operand.vmem [shape: f32[8,1], index: 6, kind: input, shape index: {}]   ;;  %s4084_s7 = inlined_call_operand.vmem [shape: f32[8,1], index: 7, kind: input, shape index: {}]   ;;  %s4085_s8 = inlined_call_operand.vmem [shape: f32[16,8,8], index: 8, kind: input, shape index: {}]   ;;  %s4086_s9 = inlined_call_operand.vmem [shape: f32[32,1], index: 9, kind: input, shape index: {}]   ;;  %s4087_s10 = inlined_call_operand.vmem [shape: f32[32,1], index: 10, kind: input, shape index: {}]   ;;  %s4088_s11 = inlined_call_operand.hbm [shape: f32[2,8,256], index: 11, kind: output, shape index: {0}]   ;;  %s4089_s12 = inlined_call_operand.hbm [shape: f32[2,32,64], index: 12, kind: output, shape index: {1}]  }
   0x1   :  { %4091 = sst [smem:[#allocation13_spill]] %s4077_s0 }
   0x2   :  { %4092 = sst [smem:[#allocation14_spill]] %s4078_s1 }
   0x3   :  { %18 = vsyncpa [#allocation7], 0 }
   0x4   :  { %20 = vsyncpa [#allocation7 + $0x1], 0 }
   0x5   :  { %21 = vsyncpa [#allocation9], 0 }
   0x6   :  { %23 = vsyncpa [#allocation9 + $0x1], 0  ;;  %s3538_s21 = smov 0   ;;  %s3540_s22 = smov 0  }
   0x7   :  { %s3542_s23 = smov 0   ;;  %s3544_s24 = smov 0  }
   0x8 LB: > { %s3559_s25 = sadd.s32 4294967295, %s3451_s24   ;;  %s3058_s26 = sadd.s32 4294967294, %s3451_s24   ;;  %s3451_s24 = sphi %s3544_s24, %s4115_s24   ;;  %s3447_s23 = sphi %s3542_s23, %s4114_s23   ;;  %s3443_s22 = sphi %s3540_s22, %s4113_s22   ;;  %s3439_s21 = sphi %s3538_s21, %s4112_s21  }
   0x9   : > { %s3563_s27 = sadd.s32 1, %s3451_s24   ;;  %s277_s28 = sadd.s32 1, %s3447_s23 }
   0xa   : > { %s274_s29 = ssub.s32 %s3451_s24, %s3563_s27  ;;  %p287_p0 = scmp.ne.s32.totalorder %s3447_s23, %s3443_s22 }
   0xb   : > { %p275_p1 = scmp.eq.s32.totalorder %s274_s29, 0  ;;  %p288_p2 = scmp.eq.s32.totalorder %s3559_s25, 1 }
   0xc   : > { %p293_p3 = scmp.ne.s32.totalorder %s3443_s22, %s3439_s21  ;;  %p294_p4 = scmp.eq.s32.totalorder %s3058_s26, 1 }
   0xd   : > { %s3574_s30 = scalar_select %p275_p1, %s3447_s23, %s277_s28  }
   0xe   : > { %p3576_p5 = por %p288_p2, %p287_p0  ;;  %p3580_p6 = por %p294_p4, %p293_p3 }
   0xf   : > { %4093 = sst [smem:[#allocation12_spill]] %s3574_s30  ;;  %p3061_p7 = scmp.ge.s32.totalorder %s3451_s24, 1 }
  0x10   : > { %p380_p8 = scmp.lt.s32.totalorder %s3451_s24, 3 }
  0x12   : > { %p381_p9 = pnand %p3061_p7, %p380_p8 }
  0x13   : > { %p431_p10 = scmp.lt.s32.totalorder (!%p381_p9), %s3559_s25, 1  ;;  %vm451_vm0 = vcmask (!%p381_p9), 1048064   ;;  %v3453_v0 = vmov (!%p381_p9), 0.0   ;;  %s3454_s15 = smov (!%p381_p9), 17   ;;  %vm454_vm1 = vcmask (!%p381_p9), 523264   ;;  %vm3461_vm2 = vmmov (!%p381_p9), 0  }
  0x14   : > { %384 = sbr.rel (%p381_p9) target bundleno = 586 (0x24a), region = 64  ;;  %596 = vrot.lane.b32.xlu1 (!%p381_p9), %v3453_v0, %s3454_s15  ;;  %442 = vst [vmem:[#allocation2 + $0x8] sm:$0xf0] (!%p381_p9), %v3453_v0  ;;  %443 = vst [vmem:[#allocation2 + $0x10] sm:$0xf0] (!%p381_p9), %v3453_v0  ;;  %677 = vmatprep.mubr.f32.mxu1 (!%p381_p9), %v3453_v0  ;;  %s4096_s1 = sld [smem:[#allocation14_spill]] (!%p381_p9)  ;;  %v541_v8 = vlaneseq (!%p381_p9) }
  0x15   : > { %452 = vst.msk [vmem:[#allocation3 + $0x8] sm:$0xff] (!%p381_p9), %vm451_vm0, %v3453_v0  ;;  %3181 = vmatprep.subr.mxu0 (!%p381_p9), %v3453_v0  ;;  %s3455_s26 = smov (!%p381_p9), 16   ;;  %s4097_s0 = sld [smem:[#allocation13_spill]] (!%p381_p9)  ;;  %3183 = vmatprep.mubr.msk.f32.mxu0 (!%p381_p9), %vm3461_vm2, %v3453_v0  ;;  %v1479_v10 = vld [vmem:[%s4083_s6] sm:$0xff] (!%p381_p9)  ;;  %v3469_v12 = vmov (!%p381_p9), 0   ;;  %v2856_v14 = vld [vmem:[%s4086_s9 + $0x8] sm:$0xff] (!%p381_p9) }
  0x16   : > { %s3460_s18 = smov (!%p381_p9), 127   ;;  %s3462_s19 = smov (!%p381_p9), 113   ;;  %v3666_v11 = vand.u32 (!%p381_p9), 127, %v541_v8  ;;  %3354 = vset.pattern.permute.xlu1 (!%p381_p9), %v3469_v12  ;;  %3355 = vset.pattern.permute.xlu0 (!%p381_p9), %v3469_v12  ;;  %v2855_v13 = vld [vmem:[%s4086_s9] sm:$0xff] (!%p381_p9)  ;;  %v2858_v15 = vld [vmem:[%s4086_s9 + $0x18] sm:$0xff] (!%p381_p9)  ;;  %v2857_v18 = vld [vmem:[%s4086_s9 + $0x10] sm:$0xff] (!%p381_p9) }
  0x17   : > { %s3465_s28 = smov (!%p381_p9), 111   ;;  %s3466_s29 = smov (!%p381_p9), 120   ;;  %v2883_v19 = vld [vmem:[%s4087_s10] sm:$0xff] (!%p381_p9)  ;;  %v2885_v25 = vld [vmem:[%s4087_s10 + $0x10] sm:$0xff] (!%p381_p9)  ;;  %vm602_vm4 = vcmask (!%p381_p9), 138240   ;;  %vm462_vm6 = vcmask (!%p381_p9), 64512  }
  0x18   : > { %694 = vrot.lane.b32.xlu1 (!%p381_p9), %v3453_v0, %s3455_s26  ;;  %v543_v17 = vadd.s32 (!%p381_p9), 128, %v3666_v11  ;;  %v548_v22 = vand.u32 (!%p381_p9), 15, %v3666_v11  ;;  %v1487_v24 = vld [vmem:[%s4084_s7] sm:$0xff] (!%p381_p9)  ;;  %v2884_v32 = vld [vmem:[%s4087_s10 + $0x8] sm:$0xff] (!%p381_p9)  ;;  %vm700_vm7 = vcmask (!%p381_p9), 130048   ;;  %vm801_vm8 = vcmask (!%p381_p9), 121856  }
  0x19   : > { %v609_v31 = vld [vmem:[%s4082_s5] sm:$0xff] (!%p381_p9)  ;;  %v2886_v40 = vld [vmem:[%s4087_s10 + $0x18] sm:$0xff] (!%p381_p9)  ;;  %v3071_v42 = vld [vmem:[%s4082_s5 + $0x8] sm:$0xff] (!%p381_p9)  ;;  %vm902_vm11 = vcmask (!%p381_p9), 7168   ;;  %vm1087_vm12 = vcmask (!%p381_p9), 1039360   ;;  %vm1514_vm13 = vcmask (!%p381_p9), 72704  }
  0x1a   : > { %v555_v20 = vand.u32 (!%p381_p9), 15, %v543_v17  ;;  %vm3695_vm5 = vcmp.gt.s32.totalorder (!%p381_p9), %v548_v22, 0  ;;  %vm3725_vm10 = vcmp.lt.s32.totalorder (!%p381_p9), %v548_v22, 15  ;;  %v3073_v48 = vld [vmem:[%s4082_s5 + $0x10] sm:$0xff] (!%p381_p9)  ;;  %v3077_v53 = vld [vmem:[%s4082_s5 + $0x18] sm:$0xff] (!%p381_p9)  ;;  %v3081_v56 = vld [vmem:[%s4082_s5 + $0x20] sm:$0xff] (!%p381_p9) }
  0x1b   : > { %s432_s16 = scalar_select %p431_p10, %s3559_s25, 1  ;;  %v3083_v62 = vld [vmem:[%s4082_s5 + $0x28] sm:$0xff]  ;;  %v461_v8 = vld [vmem:[%s4079_s2] sm:$0xff]  ;;  %vm1188_vm15 = vcmask 924672   ;;  %v3101_v26 = vld [vmem:[%s4085_s8 + $0x10] sm:$0xff]  ;;  %vm1291_vm0 = vcmask 916480  }
  0x1c   : > { %vm3691_vm3 = vcmp.gt.s32.totalorder %v555_v20, 0  ;;  %vm3712_vm9 = vcmp.lt.s32.totalorder %v555_v20, 15  ;;  %v3099_v20 = vld [vmem:[%s4085_s8 + $0x8] sm:$0xff]  ;;  %v3104_v28 = vld [vmem:[%s4085_s8 + $0x18] sm:$0xff]  ;;  %v3116_v39 = vld [vmem:[%s4085_s8 + $0x40] sm:$0xff] }
  0x1d   : > { %s3064_s17 = sshll.u32 %s432_s16, 3  ;;  %s3456_s16 = smov 15  }
  0x1e   : > { %s439_s20 = scalar_lea.vmem %s4096_s1, %s3064_s17  ;;  %s434_s30 = scalar_lea.vmem %s4097_s0, %s3064_s17 }
  0x1f   : > { %v444_v1 = vld [vmem:[%s439_s20] sm:$0xff]  ;;  %s4090_s17 = smov 8   ;;  %s3463_s20 = smov 7  }
  0x20   : > { %v456_v2 = vld [vmem:[%s434_s30] sm:$0xff]  ;;  %448 = vst [vmem:[#allocation2 + $0x8] sm:$0xf] %v444_v1  ;;  %v446_v3 = vcombine.high %v444_v1, %v444_v1  ;;  %s3457_s30 = smov 1  }
  0x21   : > { %455 = vst.msk [vmem:[#allocation3 + $0x8] sm:$0xff] %vm454_vm1, %v456_v2  ;;  %v457_v7 = vsel %vm454_vm1, %v456_v2, 0.0 }
  0x22   : > { %449 = vst [vmem:[#allocation2 + $0x10] sm:$0xf] %v446_v3  ;;  %v576_v3 = vand.u32 7, %v3666_v11  ;;  %v3108_v11 = vld [vmem:[%s4085_s8 + $0x28] sm:$0xff] }
  0x24   : > { %vm3771_vm14 = vcmp.gt.s32.totalorder %v576_v3, 0 }
  0x27   : > { %v3602_v4 = vld [vmem:[#allocation2 + $0x8] sm:$0xff] }
  0x28   : > { %598 = vrot.lane.b32.xlu0 %v3602_v4, %s3454_s15  ;;  %696 = vrot.lane.b32.xlu1 %v3602_v4, %s3455_s26  ;;  %v3620_v6 = vld [vmem:[#allocation3 + $0x8] sm:$0xff] }
  0x29   : > { %v3606_v5 = vld [vmem:[#allocation2 + $0x10] sm:$0xff] }
  0x2c   : > { %600 = vrot.lane.b32.xlu0 %v3606_v5, %s3454_s15  ;;  %797 = vrot.lane.b32.xlu1 %v3602_v4, %s3456_s16  ;;  %s3458_s15 = smov 9  }
  0x30   : > { %698 = vrot.lane.b32.xlu0 %v3606_v5, %s3455_s26  ;;  %799 = vrot.lane.b32.xlu1 %v3606_v5, %s3456_s16  ;;  %s3464_s26 = smov 112  }
  0x34   : > { %795 = vrot.lane.b32.xlu1 %v3453_v0, %s3456_s16  ;;  %s3467_s16 = smov 121  }
  0x38   : > { %898 = vrot.lane.b32.xlu1 %v3602_v4, %s3457_s30 }
  0x3c   : > { %900 = vrot.lane.b32.xlu1 %v3606_v5, %s3457_s30 }
  0x40   : > { %3345 = vrot.lane.b32.xlu1 %v3453_v0, %s3457_s30 }
  0x44   : > { %1510 = vrot.lane.b32.xlu1 %v3453_v0, %s3458_s15 }
  0x48   : > { %1512 = vrot.lane.b32.xlu1 %v3620_v6, %s3458_s15  ;;  %s3468_s15 = smov 119  }
  0x4c   : > { %1601 = vrot.lane.b32.xlu1 %v3620_v6, %s4090_s17 }
  0x4f   : > { %458 = vadd.xlane.f32.xlu0 %v457_v7 }
  0x50   : > { %1687 = vrot.lane.b32.xlu1 %v3620_v6, %s3457_s30 }
  0x54   : > { %1083 = vrot.lane.b32.xlu1 %v3606_v5, %s3460_s18 }
  0x58   : > { %1085 = vrot.lane.b32.xlu1 %v3453_v0, %s3460_s18 }
  0x5c   : > { %1081 = vrot.lane.b32.xlu1 %v3602_v4, %s3460_s18 }
  0x60   : > { %1857 = vrot.lane.b32.xlu1 %v3620_v6, %s4090_s17 }
  0x64   : > { %1186 = vrot.lane.b32.xlu1 %v3453_v0, %s3462_s19 }
  0x65   : > { %3350 = vrot.lane.b32.xlu0 %v3453_v0, %s4090_s17  ;;  %s3470_s17 = smov [#allocation8]  }
  0x66   : > { %s3361_s0 = sshll.u32 %s3470_s17, 4  ;;  %s3362_s0 = int_to_ptr.vmem [resolvable:$false] %s3361_s0 }
  0x67   : > { %s3363_s1 = scalar_lea.vmem %s3362_s0, 1024 }
  0x68   : > { %1941 = vrot.lane.b32.xlu1 %v3453_v0, %s3463_s20 }
  0x69   : > { %1184 = vrot.lane.b32.xlu0 %v3606_v5, %s3462_s19 }
  0x6c   : > { %1287 = vrot.lane.b32.xlu1 %v3606_v5, %s3464_s26 }
  0x6d   : > { %1182 = vrot.lane.b32.xlu0 %v3602_v4, %s3462_s19 }
  0x70   : > { %1285 = vrot.lane.b32.xlu1 %v3602_v4, %s3464_s26 }
  0x71   : > { %1943 = vrot.lane.b32.xlu0 %v3620_v6, %s3463_s20 }
  0x74   : > { %2194 = vrot.lane.b32.xlu1 %v3453_v0, %s3457_s30 }
  0x75   : > { %1289 = vrot.lane.b32.xlu0 %v3453_v0, %s3464_s26 }
  0x78   : > { %1384 = vrot.lane.b32.xlu1 %v3606_v5, %s3465_s28 }
  0x79   : > { %2108 = vrot.lane.b32.xlu0 %v3620_v6, %s3460_s18 }
  0x7c   : > { %1382 = vrot.lane.b32.xlu1 %v3602_v4, %s3465_s28 }
  0x7d   : > { %2196 = vrot.lane.b32.xlu0 %v3620_v6, %s3457_s30 }
  0x80   : > { %2444 = vrot.lane.b32.xlu1 %v3620_v6, %s3466_s29 }
  0x81   : > { %1386 = vrot.lane.b32.xlu0 %v3453_v0, %s3465_s28 }
  0x84   : > { %2688 = vrot.lane.b32.xlu1 %v3620_v6, %s3466_s29 }
  0x85   : > { %2358 = vrot.lane.b32.xlu0 %v3620_v6, %s3467_s16 }
  0x86   : > { %v597_v9 = vpop.permute.xlu1 %596 }
  0x88   : > { %1482 = vperm.xlu1 %3354, %v1479_v10  }
  0x89   : > { %2602 = vrot.lane.b32.xlu0 %v3620_v6, %s3460_s18  ;;  %s3964_s18 = sand.u32 1, %s3443_s22  }
  0x8a   : > { %v695_v16 = vpop.permute.xlu1 %694  ;;  %s3063_s28 = sshll.u32 %s3964_s18, 5  ;;  %s2925_s26 = scalar_lea.sflag [#allocation9], %s3964_s18 }
  0x8b   : > { %s3970_s29 = scalar_lea.vmem [#allocation8], %s3063_s28 }
  0x8c   : > { %2866 = vperm.xlu1 %3354, %v2856_v14   ;;  %s2952_s16 = sshll.u32 %s3970_s29, 4  ;;  %s3989_s16 = int_to_ptr.vmem [resolvable:$true] %s2952_s16 }
  0x8d   : > { %2769 = vrot.lane.b32.xlu0 %v3620_v6, %s3468_s15  ;;  %s3146_s15 = sshll.u32 %s3559_s25, 9  ;;  %s3357_s28 = scalar_lea.vmem %s3989_s16, 512 }
  0x8e   : > { %s3994_s20 = scalar_lea.hbm %s4089_s12, %s3146_s15  ;;  %p3358_p11 = scmp.ne.s32.totalorder %s3989_s16, %s3357_s28 }
  0x8f   : > { %p3364_p0 = scmp.lt.s32.totalorder %s3989_s16, %s3362_s0  ;;  %p3365_p1 = scmp.lt.s32.totalorder %s3363_s1, %s3357_s28 }
  0x90   : > { %2871 = vperm.xlu1 %3354, %v2857_v18   ;;  %p3359_p12 = pnand %p3358_p11, %p3576_p5 }
  0x91   : > { %2861 = vperm.xlu0 %3355, %v2855_v13   ;;  %p3366_p2 = por %p3365_p1, %p3364_p0 }
  0x92   : > { %p3360_p13 = pneg %p3359_p12 }
  0x94   : > { %1490 = vperm.xlu1 %3354, %v1487_v24   ;;  %v3087_v24 = vld [vmem:[%s4082_s5 + $0x30] sm:$0xff]  ;;  %p3367_p3 = pnand %p3366_p2, %p3360_p13 }
  0x95   : > { %2876 = vperm.xlu0 %3355, %v2858_v15   ;;  %v1518_v15 = vld [vmem:[%s4085_s8] sm:$0xff] }
  0x98   : > { %2894 = vperm.xlu1 %3354, %v2884_v32  }
  0x99   : > { %2889 = vperm.xlu0 %3355, %v2883_v19  }
  0x9a   : > { %v599_v21 = vpop.permute.xlu0 %598  ;;  %v697_v23 = vpop.permute.xlu1 %696 }
  0x9b   : > { %v603_v33 = vsel %vm602_vm4, %v597_v9, %v599_v21  ;;  %v701_v34 = vsel %vm700_vm7, %v695_v16, %v697_v23 }
  0x9c   : > { %2904 = vperm.xlu1 %3354, %v2886_v40  }
  0x9d   : > { %2899 = vperm.xlu0 %3355, %v2885_v25  }
  0x9e   : > { %v601_v27 = vpop.permute.xlu0 %600  ;;  %v798_v29 = vpop.permute.xlu1 %797 }
  0x9f   : > { %v604_v30 = vsel %vm602_vm4, %v599_v21, %v601_v27  ;;  %vm3835_vm4 = vcmp.lt.s32.totalorder %v576_v3, 7 }
  0xa0   : > { %3068 = vmatprep.subr.msk.mxu1 %vm3691_vm3, %v604_v30 }
  0xa1   : > { %3069 = vmatpush1.msk.msra.mxu1 %vm3695_vm5, %v603_v33 }
  0xa2   : > { %v699_v35 = vpop.permute.xlu0 %698  ;;  %v800_v36 = vpop.permute.xlu1 %799  ;;  %3070 = vmatmul.mubr.msk.f32.vlgmr.msra.gmra.mrb[0].mxu1 %vm462_vm6, %v609_v31 }
  0xa3   : > { %v702_v37 = vsel %vm700_vm7, %v697_v23, %v699_v35  ;;  %v803_v38 = vsel %vm801_vm8, %v798_v29, %v800_v36  ;;  %772 = vmatprep.mubr.f32.mxu1 %v3453_v0  ;;  %v3091_v35 = vld [vmem:[%s4082_s5 + $0x38] sm:$0xff]  ;;  %v3106_v36 = vld [vmem:[%s4085_s8 + $0x20] sm:$0xff] }
  0xa4   : > { %708 = vmatprep.subr.mxu1 %v702_v37 }
  0xa5   : > { %709 = vmatpush1.msra.mxu1 %v701_v34 }
  0xa6   : > { %v796_v41 = vpop.permute.xlu1 %795  ;;  %3074 = vmatprep.subr.msk.mxu1 %vm3712_vm9, %v803_v38 }
  0xa7   : > { %v802_v43 = vsel %vm801_vm8, %v796_v41, %v798_v29 }
  0xaa   : > { %v899_v45 = vpop.permute.xlu1 %898  ;;  %3072 = vmatmul.mubr.msk.f32.vlgmr.msra.gmra.mrb[0].mxu1 %vm462_vm6, %v3071_v42 }
  0xab   : > { %3075 = vmatpush1.msk.msra.mxu1 %vm3725_vm10, %v802_v43  ;;  %877 = vmatprep.mubr.f32.mxu1 %v3453_v0 }
  0xae   : > { %v901_v46 = vpop.permute.xlu1 %900 }
  0xaf   : > { %v904_v47 = vsel %vm902_vm11, %v899_v45, %v901_v46 }
  0xb0   : > { %3078 = vmatprep.subr.msk.mxu1 %vm3691_vm3, %v904_v47 }
  0xb2   : > { %v3346_v49 = vpop.permute.xlu1 %3345  ;;  %3076 = vmatmul.mubr.msk.f32.vlgmr.msra.gmra.mrb[0].mxu1 %vm462_vm6, %v3073_v48 }
  0xb3   : > { %v3347_v50 = vunpack.i.l.bf16 %v3346_v49  ;;  %978 = vmatprep.mubr.f32.mxu1 %v3453_v0  ;;  %v3348_v16 = vunpack.i.h.bf16 %v3346_v49  ;;  %v3093_v49 = vld [vmem:[%s4082_s5 + $0x40] sm:$0xff] }
  0xb5   : > { %v903_v51 = vsel %vm902_vm11, %v3347_v50, %v899_v45  ;;  %v3111_v45 = vld [vmem:[%s4085_s8 + $0x30] sm:$0xff]  ;;  %v3113_v50 = vld [vmem:[%s4085_s8 + $0x38] sm:$0xff] }
  0xb6   : > { %v1511_v52 = vpop.permute.xlu1 %1510  ;;  %3079 = vmatpush1.msk.msra.mxu1 %vm3695_vm5, %v903_v51 }
  0xb7   : > { %998 = vmatprep.subr.mxu1 %v3606_v5 }
  0xba   : > { %v1513_v54 = vpop.permute.xlu1 %1512  ;;  %3080 = vmatmul.mubr.msk.f32.vlgmr.msra.gmra.mrb[0].mxu1 %vm462_vm6, %v3077_v53 }
  0xbb   : > { %999 = vmatpush1.msra.mxu1 %v3602_v4  ;;  %1062 = vmatprep.mubr.f32.mxu1 %v3453_v0  ;;  %v1515_v9 = vsel %vm1514_vm13, %v1511_v52, %v1513_v54  ;;  %v3119_v52 = vld [vmem:[%s4085_s8 + $0x48] sm:$0xff]  ;;  %v3121_v54 = vld [vmem:[%s4085_s8 + $0x50] sm:$0xff] }
  0xbe   : > { %v1602_v55 = vpop.permute.xlu1 %1601 }
  0xc2   : > { %v1688_v57 = vpop.permute.xlu1 %1687  ;;  %3082 = vmatmul.mubr.msk.f32.vlgmr.msra.gmra.mrb[0].mxu1 %vm462_vm6, %v3081_v56 }
  0xc3   : > { %1163 = vmatprep.mubr.f32.mxu1 %v3453_v0  ;;  %v1689_v21 = vsel %vm902_vm11, %v3348_v16, %v1688_v57  ;;  %v3126_v57 = vld [vmem:[%s4085_s8 + $0x60] sm:$0xff] }
  0xc6   : > { %v1084_v58 = vpop.permute.xlu1 %1083 }
  0xca   : > { %v1086_v59 = vpop.permute.xlu1 %1085 }
  0xcb   : > { %v1089_v60 = vsel %vm1087_vm12, %v1084_v58, %v1086_v59 }
  0xcc   : > { %3084 = vmatprep.subr.msk.mxu1 %vm3712_vm9, %v1089_v60  ;;  %v3131_v60 = vld [vmem:[%s4085_s8 + $0x70] sm:$0xff] }
  0xce   : > { %v1082_v61 = vpop.permute.xlu1 %1081 }
  0xcf   : > { %v1088_v63 = vsel %vm1087_vm12, %v1082_v61, %v1084_v58  ;;  %v3128_v58 = vld [vmem:[%s4085_s8 + $0x68] sm:$0xff]  ;;  %v3133_v61 = vld [vmem:[%s4085_s8 + $0x78] sm:$0xff] }
  0xd0   : > { %3085 = vmatpush1.msk.msra.mxu1 %vm3725_vm10, %v1088_v63 }
  0xd1   : > { %3086 = vmatmul.mubr.msk.f32.vlgmr.msra.gmra.mrb[0].mxu1 %vm462_vm6, %v3083_v62  ;;  %v536_v62 = vld [vmem:[%s4080_s3] sm:$0xff] }
  0xd2   : > { %v1858_v1 = vpop.permute.xlu1 %1857  ;;  %1264 = vmatprep.mubr.f32.mxu1 %v3453_v0 }
  0xd6   : > { %v1187_v2 = vpop.permute.xlu1 %1186 }
  0xda   : > { %v1942_v4 = vpop.permute.xlu1 %1941 }
  0xdc   : > { %v459_v5 = vpop.xlane.xlu0 %458 }
  0xdd   : > { %v460_v7 = vmul.f32 0.015625, %v459_v5 }
  0xde   : > { %v1288_v14 = vpop.permute.xlu1 %1287 }
  0xdf   : > { %3182 = vmatpush3.msra.mxu0 %v460_v7 }
  0xe0   : > { %3184 = vmatmul.mubr.msk.f32.vlgmr.msra.gmra.mrb[0].mxu0 %vm462_vm6, %v461_v8  ;;  %v3351_v12 = vpop.permute.xlu0 %3350  ;;  %3186 = vmatprep.subr.mxu0 %v3453_v0 }
  0xe1   : > { %v3352_v13 = vunpack.i.l.bf16 %v3351_v12  ;;  %3187 = vmatpush3.msk.msra.mxu0 %vm3771_vm14, %v1515_v9  ;;  %3188 = vmatprep.mubr.msk.f32.mxu0 %vm3461_vm2, %v3453_v0  ;;  %v3353_v27 = vunpack.i.h.bf16 %v3351_v12 }
  0xe2   : > { %3191 = vmatprep.subr.mxu0 %v3453_v0  ;;  %v1286_v22 = vpop.permute.xlu1 %1285 }
  0xe3   : > { %v1603_v17 = vsel %vm462_vm6, %v3352_v13, %v1602_v55  ;;  %v1859_v31 = vsel %vm462_vm6, %v3353_v27, %v1858_v1  ;;  %v1292_v33 = vsel %vm1291_vm0, %v1286_v22, %v1288_v14  ;;  %v3124_v55 = vld [vmem:[%s4085_s8 + $0x58] sm:$0xff]  ;;  %v538_v1 = vld [vmem:[%s4081_s4] sm:$0xff] }
  0xe4   : > { %v1185_v18 = vpop.permute.xlu0 %1184  ;;  %3189 = vmatmul.mubr.msk.f32.vlgmr.msra.gmra.mrb[2].mxu0 %vm462_vm6, %v1518_v15 }
  0xe5   : > { %v1190_v19 = vsel %vm1188_vm15, %v1185_v18, %v1187_v2  ;;  %3192 = vmatpush3.msra.mxu0 %v1603_v17  ;;  %3193 = vmatprep.mubr.msk.f32.mxu0 %vm3461_vm2, %v3453_v0 }
  0xe6   : > { %3088 = vmatprep.subr.msk.mxu1 %vm3691_vm3, %v1190_v19  ;;  %3196 = vmatprep.subr.mxu0 %v3453_v0  ;;  %v2195_v30 = vpop.permute.xlu1 %2194  ;;  %vm1945_vm3 = vcmask 56320  }
  0xe8   : > { %v1183_v23 = vpop.permute.xlu0 %1182  ;;  %3194 = vmatmul.mubr.msk.f32.vlgmr.msra.gmra.mrb[4].mxu0 %vm462_vm6, %v3099_v20 }
  0xe9   : > { %v1189_v25 = vsel %vm1188_vm15, %v1183_v23, %v1185_v18  ;;  %3197 = vmatpush3.msk.msra.mxu0 %vm3771_vm14, %v1689_v21  ;;  %3198 = vmatprep.mubr.msk.f32.mxu0 %vm3461_vm2, %v3453_v0 }
  0xea   : > { %3089 = vmatpush1.msk.msra.mxu1 %vm3695_vm5, %v1189_v25  ;;  %3201 = vmatprep.subr.mxu0 %v3453_v0  ;;  %v1385_v40 = vpop.permute.xlu1 %1384  ;;  %vm1388_vm5 = vcmask 908288  }
  0xeb   : > { %3090 = vmatmul.mubr.msk.f32.vlgmr.msra.gmra.mrb[0].mxu1 %vm462_vm6, %v3087_v24 }
  0xec   : > { %v1944_v29 = vpop.permute.xlu0 %1943  ;;  %1363 = vmatprep.mubr.f32.mxu1 %v3453_v0  ;;  %3199 = vmatmul.mubr.msk.f32.vlgmr.msra.gmra.mrb[6].mxu0 %vm462_vm6, %v3101_v26 }
  0xed   : > { %3202 = vmatpush3.msra.mxu0 %v3620_v6  ;;  %3203 = vmatprep.mubr.msk.f32.mxu0 %vm3461_vm2, %v3453_v0  ;;  %v1946_v37 = vsel %vm1945_vm3, %v1942_v4, %v1944_v29 }
  0xee   : > { %3206 = vmatprep.subr.mxu0 %v3453_v0  ;;  %v1383_v43 = vpop.permute.xlu1 %1382 }
  0xef   : > { %v1389_v47 = vsel %vm1388_vm5, %v1383_v43, %v1385_v40 }
  0xf0   : > { %v1290_v32 = vpop.permute.xlu0 %1289  ;;  %3204 = vmatmul.mubr.msk.f32.vlgmr.msra.gmra.mrb[8].mxu0 %vm462_vm6, %v3104_v28 }
  0xf1   : > { %v1293_v34 = vsel %vm1291_vm0, %v1288_v14, %v1290_v32  ;;  %3207 = vmatpush3.msra.mxu0 %v1859_v31  ;;  %3208 = vmatprep.mubr.msk.f32.mxu0 %vm3461_vm2, %v3453_v0 }
  0xf2   : > { %1299 = vmatprep.subr.mxu1 %v1293_v34  ;;  %3211 = vmatprep.subr.mxu0 %v3453_v0  ;;  %v2445_v53 = vpop.permute.xlu1 %2444 }
  0xf3   : > { %1300 = vmatpush1.msra.mxu1 %v1292_v33 }
  0xf4   : > { %v2109_v41 = vpop.permute.xlu0 %2108  ;;  %3092 = vmatmul.mubr.msk.f32.vlgmr.msra.gmra.mrb[0].mxu1 %vm462_vm6, %v3091_v35  ;;  %3209 = vmatmul.mubr.msk.f32.vlgmr.msra.gmra.mrb[10].mxu0 %vm462_vm6, %v3106_v36 }
  0xf5   : > { %1464 = vmatprep.mubr.f32.mxu1 %v3453_v0  ;;  %3212 = vmatpush3.msk.msra.mxu0 %vm3835_vm4, %v1946_v37 }
  0xf6   : > { %3213 = vmatprep.mubr.msk.f32.mxu0 %vm3461_vm2, %v3453_v0  ;;  %3216 = vmatprep.subr.mxu0 %v3453_v0  ;;  %v2689_v59 = vpop.permute.xlu1 %2688 }
  0xf8   : > { %v2197_v42 = vpop.permute.xlu0 %2196  ;;  %3214 = vmatmul.mubr.msk.f32.vlgmr.msra.gmra.mrb[12].mxu0 %vm462_vm6, %v3108_v11 }
  0xf9   : > { %3217 = vmatpush3.msra.mxu0 %v3620_v6  ;;  %3218 = vmatprep.mubr.msk.f32.mxu0 %vm3461_vm2, %v3453_v0  ;;  %v2198_v51 = vsel %vm902_vm11, %v2195_v30, %v2197_v42 }
  0xfa   : > { %3221 = vmatprep.subr.mxu0 %v3453_v0 }
  0xfc   : > { %v1387_v46 = vpop.permute.xlu0 %1386  ;;  %3219 = vmatmul.mubr.msk.f32.vlgmr.msra.gmra.mrb[14].mxu0 %vm462_vm6, %v3111_v45 }
  0xfd   : > { %v1390_v48 = vsel %vm1388_vm5, %v1385_v40, %v1387_v46  ;;  %3222 = vmatpush3.msk.msra.mxu0 %vm3835_vm4, %v2109_v41  ;;  %3223 = vmatprep.mubr.msk.f32.mxu0 %vm3461_vm2, %v3453_v0 }
  0xfe   : > { %3094 = vmatprep.subr.msk.mxu1 %vm3712_vm9, %v1390_v48  ;;  %3226 = vmatprep.subr.mxu0 %v3453_v0 }
  0xff   : > { %3095 = vmatpush1.msk.msra.mxu1 %vm3725_vm10, %v1389_v47 }
 0x100   : > { %3096 = vmatmul.mubr.msk.f32.vlgmr.msra.gmra.mrb[0].mxu1 %vm462_vm6, %v3093_v49  ;;  %3224 = vmatmul.mubr.msk.f32.vlgmr.msra.gmra.mrb[16].mxu0 %vm462_vm6, %v3113_v50  ;;  %v2359_v44 = vpop.permute.xlu0 %2358 }
 0x101   : > { %3227 = vmatpush3.msk.msra.mxu0 %vm3771_vm14, %v2198_v51  ;;  %3228 = vmatprep.mubr.msk.f32.mxu0 %vm3461_vm2, %v3453_v0 }
 0x102   : > { %3236 = vmatprep.subr.mxu0 %v3453_v0  ;;  %3231 = vmatprep.subr.mxu1 %v3453_v0 }
 0x103   : > { %3232 = vmatpush3.msra.mxu1 %v3620_v6  ;;  %3233 = vmatprep.mubr.msk.f32.mxu1 %vm3461_vm2, %v3453_v0 }
 0x104   : > { %3229 = vmatmul.mubr.msk.f32.vlgmr.msra.gmra.mrb[18].mxu0 %vm462_vm6, %v3116_v39  ;;  %3234 = vmatmul.mubr.msk.f32.vlgmr.msra.gmra.mrb[2].mxu1 %vm462_vm6, %v3119_v52  ;;  %v2603_v56 = vpop.permute.xlu0 %2602 }
 0x105   : > { %3237 = vmatpush3.msk.msra.mxu0 %vm3771_vm14, %v2359_v44  ;;  %3238 = vmatprep.mubr.msk.f32.mxu0 %vm3461_vm2, %v3453_v0 }
 0x106   : > { %3246 = vmatprep.subr.mxu0 %v3453_v0  ;;  %3241 = vmatprep.subr.mxu1 %v3453_v0 }
 0x107   : > { %3242 = vmatpush3.msra.mxu1 %v2445_v53  ;;  %3243 = vmatprep.mubr.msk.f32.mxu1 %vm3461_vm2, %v3453_v0  ;;  %v3952_v29 = vpop.permute.xlu1 %1482 }
 0x108   : > { %3239 = vmatmul.mubr.msk.f32.vlgmr.msra.gmra.mrb[20].mxu0 %vm462_vm6, %v3121_v54  ;;  %3244 = vmatmul.mubr.msk.f32.vlgmr.msra.gmra.mrb[4].mxu1 %vm462_vm6, %v3124_v55 }
 0x109   : > { %3247 = vmatpush3.msra.mxu0 %v3620_v6  ;;  %3248 = vmatprep.mubr.msk.f32.mxu0 %vm3461_vm2, %v3453_v0  ;;  %v2770_v6 = vpop.permute.xlu0 %2769 }
 0x10a   : > { %3251 = vmatprep.subr.mxu1 %v3453_v0  ;;  %3253 = vmatprep.mubr.msk.f32.mxu1 %vm3461_vm2, %v3453_v0 }
 0x10b   : > { %3252 = vmatpush3.msk.msra.mxu1 %vm3835_vm4, %v2603_v56  ;;  %3256 = vmatprep.subr.mxu0 %v3453_v0  ;;  %v2867_v11 = vpop.permute.xlu1 %2866 }
 0x10c   : > { %3249 = vmatmul.mubr.msk.f32.vlgmr.msra.gmra.mrb[22].mxu0 %vm462_vm6, %v3126_v57  ;;  %3254 = vmatmul.mubr.msk.f32.vlgmr.msra.gmra.mrb[6].mxu1 %vm462_vm6, %v3128_v58 }
 0x10d   : > { %3257 = vmatpush3.msra.mxu0 %v2689_v59  ;;  %3258 = vmatprep.mubr.msk.f32.mxu0 %vm3461_vm2, %v3453_v0 }
 0x10e   : > { %3261 = vmatprep.subr.mxu1 %v3453_v0  ;;  %3263 = vmatprep.mubr.msk.f32.mxu1 %vm3461_vm2, %v3453_v0 }
 0x10f   : > { %3262 = vmatpush3.msk.msra.mxu1 %vm3835_vm4, %v2770_v6  ;;  %v2872_v56 = vpop.permute.xlu1 %2871 }
 0x110   : > { %3259 = vmatmul.mubr.msk.f32.vlgmr.msra.gmra.mrb[24].mxu0 %vm462_vm6, %v3131_v60  ;;  %3264 = vmatmul.mubr.msk.f32.vlgmr.msra.gmra.mrb[8].mxu1 %vm462_vm6, %v3133_v61  ;;  %v2862_v27 = vpop.permute.xlu0 %2861 }
 0x114   : > { %v3960_v35 = vpop.permute.xlu0 %2876 }
 0x118   : > { %v2890_v49 = vpop.permute.xlu0 %2889 }
 0x1b3   : > { %v532_v63 = vpop.f32.mrb[0].mxu0 }
 0x1b4   : > { %v537_v2 = vmul.f32 %v536_v62, %v532_v63  ;;  %v3185_v3 = vpop.f32.mrb[1].mxu0 }
 0x1b6   : > { %v539_v4 = vadd.f32 %v538_v1, %v537_v2  ;;  %v3975_v2 = vpop.permute.xlu1 %1490 }
 0x1b7   : > { %v1588_v0 = vpop.f32.mrb[2].mxu0 }
 0x1b8   : > { %v540_v5 = vmax.f32 %v539_v4, 0.0  ;;  %1592 = vst.msk [vmem:[#allocation5] sm:$0xff] %vm454_vm1, %v1588_v0  ;;  %v3190_v7 = vpop.f32.mrb[3].mxu0 }
 0x1ba   : > { %1497 = vperm.xlu0 %3355, %v540_v5   ;;  %v2895_v5 = vpop.permute.xlu1 %2894 }
 0x1bb   : > { %v1674_v8 = vpop.f32.mrb[4].mxu0 }
 0x1bc   : > { %v3195_v9 = vpop.f32.mrb[5].mxu0 }
 0x1bf   : > { %v1678_v10 = vld [vmem:[#allocation5] sm:$0xff]  ;;  %v1763_v12 = vpop.f32.mrb[6].mxu0 }
 0x1c0   : > { %v1679_v13 = vadd.f32 %v1678_v10, %v1674_v8  ;;  %v3200_v14 = vpop.f32.mrb[7].mxu0 }
 0x1c2   : > { %1680 = vst.msk [vmem:[#allocation5] sm:$0xff] %vm454_vm1, %v1679_v13 }
 0x1c3   : > { %v1842_v15 = vpop.f32.mrb[8].mxu0 }
 0x1c4   : > { %v3205_v16 = vpop.f32.mrb[9].mxu0 }
 0x1c7   : > { %v1930_v17 = vpop.f32.mrb[10].mxu0 }
 0x1c8   : > { %1934 = vst.msk [vmem:[#allocation5 + $0x8] sm:$0xff] %vm454_vm1, %v1930_v17  ;;  %v3210_v18 = vpop.f32.mrb[11].mxu0  ;;  %v2900_v17 = vpop.permute.xlu0 %2899 }
 0x1c9   : > { %v1767_v19 = vld [vmem:[#allocation5] sm:$0xff] }
 0x1ca   : > { %v1768_v20 = vadd.f32 %v1767_v19, %v1763_v12 }
 0x1cb   : > { %v2020_v21 = vpop.f32.mrb[12].mxu0 }
 0x1cc   : > { %1769 = vst.msk [vmem:[#allocation5] sm:$0xff] %vm454_vm1, %v1768_v20  ;;  %v3215_v22 = vpop.f32.mrb[13].mxu0 }
 0x1cf   : > { %v2024_v23 = vld [vmem:[#allocation5 + $0x8] sm:$0xff]  ;;  %v2099_v24 = vpop.f32.mrb[14].mxu0 }
 0x1d0   : > { %v2025_v25 = vadd.f32 %v2024_v23, %v2020_v21  ;;  %v3220_v26 = vpop.f32.mrb[15].mxu0  ;;  %v2905_v23 = vpop.permute.xlu1 %2904 }
 0x1d2   : > { %2026 = vst.msk [vmem:[#allocation5 + $0x8] sm:$0xff] %vm454_vm1, %v2025_v25 }
 0x1d3   : > { %v3955_v30 = vpop.f32.mrb[0].mxu1  ;;  %v1846_v28 = vld [vmem:[#allocation5] sm:$0xff]  ;;  %v2183_v31 = vpop.f32.mrb[16].mxu0 }
 0x1d4   : > { %v3957_v32 = vpop.f32.mrb[1].mxu1  ;;  %v1847_v33 = vadd.f32 %v1846_v28, %v1842_v15  ;;  %v3225_v34 = vpop.f32.mrb[17].mxu0 }
 0x1d6   : > { %1848 = vst.msk [vmem:[#allocation5] sm:$0xff] %vm454_vm1, %v1847_v33 }
 0x1d7   : > { %v2272_v36 = vpop.f32.mrb[18].mxu0  ;;  %v2349_v37 = vpop.f32.mrb[2].mxu1 }
 0x1d8   : > { %2276 = vst.msk [vmem:[#allocation5 + $0x10] sm:$0xff] %vm454_vm1, %v2272_v36  ;;  %v3230_v38 = vpop.f32.mrb[19].mxu0  ;;  %v3235_v40 = vpop.f32.mrb[3].mxu1 }
 0x1d9   : > { %v2103_v41 = vld [vmem:[#allocation5 + $0x8] sm:$0xff] }
 0x1da   : > { %v2104_v42 = vadd.f32 %v2103_v41, %v2099_v24 }
 0x1db   : > { %v2433_v43 = vpop.f32.mrb[20].mxu0  ;;  %v2516_v45 = vpop.f32.mrb[4].mxu1 }
 0x1dc   : > { %2105 = vst.msk [vmem:[#allocation5 + $0x8] sm:$0xff] %vm454_vm1, %v2104_v42  ;;  %v3240_v46 = vpop.f32.mrb[21].mxu0  ;;  %v3245_v47 = vpop.f32.mrb[5].mxu1 }
 0x1dd   : > { %v2851_v48 = vld [vmem:[#allocation5] sm:$0xff] }
 0x1de   : > { %v2879_v50 = vmul.f32 %v2862_v27, %v2851_v48 }
 0x1df   : > { %v2595_v51 = vpop.f32.mrb[22].mxu0  ;;  %v2353_v39 = vld [vmem:[#allocation5 + $0x10] sm:$0xff]  ;;  %v2677_v52 = vpop.f32.mrb[6].mxu1 }
 0x1e0   : > { %2599 = vst.msk [vmem:[#allocation5 + $0x18] sm:$0xff] %vm454_vm1, %v2595_v51  ;;  %v2907_v44 = vadd.f32 %v2890_v49, %v2879_v50  ;;  %v2354_v53 = vadd.f32 %v2353_v39, %v2349_v37  ;;  %v3250_v54 = vpop.f32.mrb[23].mxu0  ;;  %v3255_v55 = vpop.f32.mrb[7].mxu1 }
 0x1e2   : > { %v2911_v57 = vmax.f32 %v2907_v44, 0.0  ;;  %2355 = vst.msk [vmem:[#allocation5 + $0x10] sm:$0xff] %vm454_vm1, %v2354_v53 }
 0x1e3   : > { %v2187_v58 = vld [vmem:[#allocation5 + $0x8] sm:$0xff]  ;;  %v2760_v59 = vpop.f32.mrb[24].mxu0  ;;  %v2844_v6 = vpop.f32.mrb[8].mxu1 }
 0x1e4   : > { %v2188_v60 = vadd.f32 %v2187_v58, %v2183_v31  ;;  %2915 = vst.msk [vmem:[%s3970_s29] sm:$0xff] %vm454_vm1, %v2911_v57  ;;  %v3260_v61 = vpop.f32.mrb[25].mxu0  ;;  %v3265_v62 = vpop.f32.mrb[9].mxu1 }
 0x1e6   : > { %2189 = vst.msk [vmem:[#allocation5 + $0x8] sm:$0xff] %vm454_vm1, %v2188_v60 }
 0x1e7   : > { %v2681_v63 = vld [vmem:[#allocation5 + $0x18] sm:$0xff] }
 0x1e8   : > { %v2682_v1 = vadd.f32 %v2681_v63, %v2677_v52 }
 0x1e9   : > { %v2437_v3 = vld [vmem:[#allocation5 + $0x10] sm:$0xff] }
 0x1ea   : > { %v2438_v4 = vadd.f32 %v2437_v3, %v2433_v43  ;;  %2683 = vst.msk [vmem:[#allocation5 + $0x18] sm:$0xff] %vm454_vm1, %v2682_v1 }
 0x1ec   : > { %2439 = vst.msk [vmem:[#allocation5 + $0x10] sm:$0xff] %vm454_vm1, %v2438_v4 }
 0x1ed   : > { %v2852_v0 = vld [vmem:[#allocation5 + $0x8] sm:$0xff] }
 0x1ee   : > { %v2880_v7 = vmul.f32 %v2867_v11, %v2852_v0 }
 0x1f0   : > { %v2908_v8 = vadd.f32 %v2895_v5, %v2880_v7 }
 0x1f1   : > { %v2764_v9 = vld [vmem:[#allocation5 + $0x18] sm:$0xff] }
 0x1f2   : > { %v2765_v10 = vadd.f32 %v2764_v9, %v2760_v59  ;;  %v2912_v12 = vmax.f32 %v2908_v8, 0.0 }
 0x1f3   : > { %v2520_v13 = vld [vmem:[#allocation5 + $0x10] sm:$0xff] }
 0x1f4   : > { %v2521_v14 = vadd.f32 %v2520_v13, %v2516_v45  ;;  %2766 = vst.msk [vmem:[#allocation5 + $0x18] sm:$0xff] %vm454_vm1, %v2765_v10  ;;  %2916 = vst.msk [vmem:[%s3970_s29 + $0x8] sm:$0xff] %vm454_vm1, %v2912_v12 }
 0x1f6   : > { %2522 = vst.msk [vmem:[#allocation5 + $0x10] sm:$0xff] %vm454_vm1, %v2521_v14 }
 0x1fb   : > { %v2848_v15 = vld [vmem:[#allocation5 + $0x18] sm:$0xff] }
 0x1fc   : > { %v2849_v16 = vadd.f32 %v2848_v15, %v2844_v6 }
 0x1fd   : > { %v2853_v18 = vld [vmem:[#allocation5 + $0x10] sm:$0xff] }
 0x1fe   : > { %2850 = vst.msk [vmem:[#allocation5 + $0x18] sm:$0xff] %vm454_vm1, %v2849_v16  ;;  %v2881_v19 = vmul.f32 %v2872_v56, %v2853_v18 }
 0x200   : > { %v2909_v20 = vadd.f32 %v2900_v17, %v2881_v19 }
 0x202   : > { %v2913_v21 = vmax.f32 %v2909_v20, 0.0 }
 0x204   : > { %2917 = vst.msk [vmem:[%s3970_s29 + $0x10] sm:$0xff] %vm454_vm1, %v2913_v21 }
 0x205   : > { %v2854_v22 = vld [vmem:[#allocation5 + $0x18] sm:$0xff] }
 0x206   : > { %v2882_v24 = vmul.f32 %v3960_v35, %v2854_v22 }
 0x208   : > { %v2910_v25 = vadd.f32 %v2905_v23, %v2882_v24 }
 0x20a   : > { %v2914_v26 = vmax.f32 %v2910_v25, 0.0 }
 0x20c   : > { %2918 = vst.msk [vmem:[%s3970_s29 + $0x18] sm:$0xff] %vm454_vm1, %v2914_v26 }
 0x20d   : > { %3370 = shalt.err (!%p3367_p3)
}
 0x20e   : > { %s3371_s29 = scalar_lea.hbm %s3994_s20, 512  ;;  %s3375_s17 = scalar_lea.hbm %s4089_s12, 1024 }
 0x20f   : > { %p3372_p4 = scmp.ne.s32.totalorder %s3994_s20, %s3371_s29  ;;  %p3376_p9 = scmp.lt.u32.totalorder %s3994_s20, %s4089_s12 }
 0x210   : > { %p3377_p10 = scmp.lt.u32.totalorder %s3375_s17, %s3371_s29  ;;  %p3379_p12 = scmp.lt.u32.totalorder %s3371_s29, %s3994_s20 }
 0x211   : > { %p3373_p7 = pnand %p3372_p4, %p3576_p5 }
 0x212   : > { %p3378_p11 = por %p3377_p10, %p3376_p9 }
 0x213   : > { %p3374_p8 = pneg %p3373_p7 }
 0x214   : > { %p3380_p13 = por %p3379_p12, %p3378_p11 }
 0x216   : > { %p3381_p0 = pnand %p3380_p13, %p3374_p8 }
 0x218   : > { %3384 = shalt.err (!%p3381_p0)
}
 0x219   : > { %s3471_s1 = smov 128   ;;  %s4110_s28 = smov 8   ;;  %v1485_v27 = vmul.f32 %v3952_v29, %v3955_v30  ;;  %v1486_v28 = vmul.f32 %v3952_v29, %v3957_v32 }
 0x21a   : > { %3283 = dma.vmem_to_hbm [thread:$0]  (%p3576_p5), %s3989_s16, 512, %s3994_s20, %s2925_s26, %s3471_s1, %s3471_s1, %s4110_s28  }
 0x21b   : > { %s3062_s15 = sshll.u32 %s3964_s18, 4  ;;  %s3145_s29 = sshll.u32 %s3559_s25, 8  ;;  %v1493_v31 = vadd.f32 %v3975_v2, %v1485_v27  ;;  %v1494_v33 = vadd.f32 %v3975_v2, %v1486_v28 }
 0x21c   : > { %s423_s19 = scalar_lea.vmem [#allocation6], %s3062_s15  ;;  %s4034_s26 = scalar_lea.hbm %s4088_s11, %s3145_s29 }
 0x21d   : > { %s2939_s17 = sshll.u32 %s423_s19, 4  ;;  %s2920_s25 = scalar_lea.sflag [#allocation7], %s3964_s18  ;;  %s4036_s17 = int_to_ptr.vmem [resolvable:$true] %s2939_s17 }
 0x21e   : > { %s3385_s30 = scalar_lea.vmem %s4036_s17, 256  ;;  %s3472_s0 = smov [#allocation6]  }
 0x21f   : > { %p3386_p1 = scmp.ne.s32.totalorder %s4036_s17, %s3385_s30  ;;  %s3389_s1 = sshll.u32 %s3472_s0, 4  ;;  %s3390_s1 = int_to_ptr.vmem [resolvable:$false] %s3389_s1 }
 0x220   : > { %s3391_s28 = scalar_lea.vmem %s3390_s1, 512  ;;  %p3392_p4 = scmp.lt.s32.totalorder %s4036_s17, %s3390_s1 }
 0x221   : > { %p3387_p2 = pnand %p3386_p1, %p3576_p5  ;;  %p3393_p7 = scmp.lt.s32.totalorder %s3391_s28, %s3385_s30 }
 0x223   : > { %p3388_p3 = pneg %p3387_p2  ;;  %p3394_p8 = por %p3393_p7, %p3392_p4 }
 0x225   : > { %p3395_p9 = pnand %p3394_p8, %p3388_p3 }
 0x239   : > { %v1498_v34 = vpop.permute.xlu0 %1497 }
 0x23a   : > { %v1500_v35 = vmul.f32 %v1498_v34, %v1493_v31  ;;  %v1501_v36 = vmul.f32 %v1498_v34, %v1494_v33 }
 0x23c   : > { %1502 = vst [vmem:[%s423_s19] sm:$0xff] %v1500_v35  ;;  %1503 = vst [vmem:[%s423_s19 + $0x8] sm:$0xff] %v1501_v36 }
 0x23d   : > { %3398 = shalt.err (!%p3395_p9)
}
 0x23e   : > { %s3399_s18 = scalar_lea.hbm %s4034_s26, 256  ;;  %s3403_s19 = scalar_lea.hbm %s4088_s11, 512 }
 0x23f   : > { %p3400_p10 = scmp.ne.s32.totalorder %s4034_s26, %s3399_s18  ;;  %p3404_p13 = scmp.lt.u32.totalorder %s4034_s26, %s4088_s11 }
 0x240   : > { %p3405_p0 = scmp.lt.u32.totalorder %s3403_s19, %s3399_s18  ;;  %p3407_p2 = scmp.lt.u32.totalorder %s3399_s18, %s4034_s26 }
 0x241   : > { %p3401_p11 = pnand %p3400_p10, %p3576_p5 }
 0x242   : > { %p3406_p1 = por %p3405_p0, %p3404_p13 }
 0x243   : > { %p3402_p12 = pneg %p3401_p11 }
 0x244   : > { %p3408_p3 = por %p3407_p2, %p3406_p1 }
 0x246   : > { %p3409_p4 = pnand %p3408_p3, %p3402_p12 }
 0x248   : > { %3412 = shalt.err (!%p3409_p4)
}
 0x249   : > { %3282 = dma.vmem_to_hbm [thread:$0]  (%p3576_p5), %s4036_s17, 256, %s4034_s26, %s2920_s25  }
 0x24a PF: > { %p3293_p7 = scmp.ge.s32.totalorder %s3451_s24, 2  ;;  %s2967_s30 = sand.u32 1, %s3439_s21  }
 0x24b   : > { %s2968_s0 = scalar_lea.sflag [#allocation7], %s2967_s30 }
 0x24c   : > { %p3287_p8 = pnand %p3293_p7, %p3580_p6 }
 0x24e   : > { %3430 = dma.done.wait (!%p3287_p8), %s2968_s0, 256  }
 0x24f   : > { %3432 = vsyncadd (!%p3287_p8), %s2968_s0, 4294967040  ;;  %s2977_s1 = scalar_lea.sflag [#allocation9], %s2967_s30 }
 0x250   : > { %3434 = dma.done.wait (!%p3287_p8), %s2977_s1, 512  }
 0x251   : > { %3436 = vsyncadd (!%p3287_p8), %s2977_s1, 4294966784  ;;  %s4111_s13 = sld [smem:[#allocation12_spill]]  ;;  %p26_p5 = scmp.ge.s32.totalorder %s3563_s27, 4  }
 0x252   : > { %s4112_s21 = smov %s3443_s22  ;;  %s4113_s22 = smov %s3447_s23 }
 0x253   : > { %s4115_s24 = smov %s3563_s27  ;;  %28 = sbr.rel (!%p26_p5) target bundleno = 8 (0x8), region = 142 }
 0x257   : > { %s4114_s23 = smov %s4111_s13 }
 0x25a   :  { %2982 = vsyncpa [#allocation7], 1 }
 0x25b   :  { %2984 = vsyncpa [#allocation7 + $0x1], 1 }
 0x25c   :  { %2985 = vsyncpa [#allocation9], 1 }
 0x25d   :  { %2987 = vsyncpa [#allocation9 + $0x1], 1 }

</bundles_post_ra>
